<compile_context>
chip_gen: v5e
topology: v5e:2x2
jax: 0.10.0
libtpu: 0.0.40
codegen_flags: <defaults>
</compile_context>

<pallas_src>
import jax
import jax.numpy as jnp
from jax.experimental import pallas as pl
from jax.experimental.pallas import tpu as pltpu

INPUT_DIM = 3
H1 = 16
H2 = 8
OUT = 1

# Packed parameter slab layout (float32, shape (32, 17)):
#   rows  0:16, cols 0:3   -> W1 (16, 3)   (torch orientation: (out, in))
#   rows  0:16, col  3     -> b1 (16,)
#   rows 16:24, cols 0:16  -> W2 (8, 16)
#   rows 16:24, col  16    -> b2 (8,)
#   row  24,    cols 0:8   -> W3 (1, 8)
#   row  24,    col  8     -> b3 (1,)
#   rows 25:32 zero padding
PACK_ROWS = 32
PACK_COLS = 17


def _attacker_kernel(x_ref, p_ref, o_ref):
    # x_ref: (3, T) batch-on-lanes features, p_ref: (32, 17) packed params,
    # o_ref: (1, T) sigmoid outputs (lane-dense).
    x = x_ref[...]                                              # (3, T)

    w1 = p_ref[0:H1, 0:INPUT_DIM]                               # (16, 3)
    b1 = p_ref[0:H1, INPUT_DIM:INPUT_DIM + 1]                   # (16, 1)
    w2 = p_ref[H1:H1 + H2, 0:H1]                                # (8, 16)
    b2 = p_ref[H1:H1 + H2, H1:H1 + 1]                           # (8, 1)
    w3 = p_ref[H1 + H2:H1 + H2 + 1, 0:H2]                       # (1, 8)
    b3 = p_ref[H1 + H2:H1 + H2 + 1, H2:H2 + 1]                  # (1, 1)

    # fc1 + ReLU on MXU (batch on lanes as RHS), bias/ReLU on VPU.
    h1 = jnp.dot(w1, x, preferred_element_type=jnp.float32) + b1     # (16, T)
    h1 = jnp.maximum(h1, 0.0)

    # fc2 + ReLU.
    h2 = jnp.dot(w2, h1, preferred_element_type=jnp.float32) + b2    # (8, T)
    h2 = jnp.maximum(h2, 0.0)

    # fc3 + Sigmoid (exp/recip land on the EUP slot).
    z = jnp.dot(w3, h2, preferred_element_type=jnp.float32) + b3     # (1, T)
    o_ref[...] = jax.nn.sigmoid(z).astype(o_ref.dtype)


def pack_params(params):
    """Pack torch-orientation params into a single (32, 17) f32 slab."""
    p = jnp.zeros((PACK_ROWS, PACK_COLS), jnp.float32)
    p = p.at[0:H1, 0:INPUT_DIM].set(params["W1"].astype(jnp.float32))
    p = p.at[0:H1, INPUT_DIM].set(params["b1"].astype(jnp.float32))
    p = p.at[H1:H1 + H2, 0:H1].set(params["W2"].astype(jnp.float32))
    p = p.at[H1:H1 + H2, H1].set(params["b2"].astype(jnp.float32))
    p = p.at[H1 + H2, 0:H2].set(params["W3"][0].astype(jnp.float32))
    p = p.at[H1 + H2, H2].set(params["b3"][0].astype(jnp.float32))
    return p


def _round_up(n, m):
    return ((n + m - 1) // m) * m


def _choose_tile_b(batch, requested):
    """Pick a lane tile: big (default 4096) but guaranteeing >= 2 grid steps
    whenever the batch allows it, so v7x megacore gets both TCs busy."""
    b128 = _round_up(max(int(batch), 1), 128)
    tile = 4096 if requested is None else _round_up(int(requested), 128)
    tile = max(128, min(tile, b128))
    if tile == b128 and b128 >= 256:          # would be a single tile -> split
        tile = _round_up((b128 + 1) // 2, 128)
    return tile


def attacker_model_forward_t(xt, packed_params, *, tile_b=None):
    """xt: (3, B) batch-on-lanes features [confidence, entropy, log_odds]
    -> (B, 1) membership probabilities."""
    F, B = xt.shape
    assert F == INPUT_DIM

    tile = _choose_tile_b(B, tile_b)
    num_tiles = pl.cdiv(B, tile)
    b_pad = num_tiles * tile

    xt = xt.astype(jnp.float32)
    if b_pad != B:
        # Zero-pad along lanes only when needed (padding flows through sigmoid
        # harmlessly and is sliced off).  No transpose pass anymore.
        xt = jnp.zeros((F, b_pad), jnp.float32).at[:, :B].set(xt)

    out_t = pl.pallas_call(
        _attacker_kernel,
        out_shape=jax.ShapeDtypeStruct((1, b_pad), jnp.float32),
        grid_spec=pltpu.PrefetchScalarGridSpec(
            num_scalar_prefetch=0,
            grid=(num_tiles,),
            in_specs=[
                pl.BlockSpec((INPUT_DIM, tile), lambda i: (0, i)),
                pl.BlockSpec((PACK_ROWS, PACK_COLS), lambda i: (0, 0)),
            ],
            out_specs=pl.BlockSpec((1, tile), lambda i: (0, i)),
        ),
        compiler_params=pltpu.CompilerParams(
            dimension_semantics=("parallel",)),
    )(xt, packed_params)

    return out_t[0, :B].reshape(B, 1)


def attacker_model_forward(x, packed_params, *, tile_b=None):
    """(B, 3) convenience entry point (matches the torch module's forward).
    Prefer attacker_model_forward_t to avoid the transpose HBM pass."""
    return attacker_model_forward_t(x.T, packed_params, tile_b=tile_b)


def init_params(key):
    """Deterministic init matching nn.Linear shapes (torch orientation (out, in))."""
    ks = jax.random.split(key, 6)

    def lin(kw, kb, fan_in, fan_out):
        bound = 1.0 / jnp.sqrt(jnp.float32(fan_in))
        W = jax.random.uniform(kw, (fan_out, fan_in), jnp.float32, -bound, bound)
        b = jax.random.uniform(kb, (fan_out,), jnp.float32, -bound, bound)
        return W, b

    W1, b1 = lin(ks[0], ks[1], INPUT_DIM, H1)
    W2, b2 = lin(ks[2], ks[3], H1, H2)
    W3, b3 = lin(ks[4], ks[5], H2, OUT)
    return {"W1": W1, "b1": b1, "W2": W2, "b2": b2, "W3": W3, "b3": b3}


def reference_forward(x, p):
    h1 = jnp.maximum(x @ p["W1"].T + p["b1"], 0.0)
    h2 = jnp.maximum(h1 @ p["W2"].T + p["b2"], 0.0)
    return jax.nn.sigmoid(h2 @ p["W3"].T + p["b3"])


if __name__ == "__main__":
    key = jax.random.PRNGKey(0)
    k_params, k_conf = jax.random.split(key)

    params = init_params(k_params)
    packed = pack_params(params)

    # Build the 3 attacker features from synthetic confidence scores, mirroring
    # the numpy preprocessing in the training script.  Features are produced
    # directly in batch-on-lanes (3, B) layout so no transpose pass precedes
    # the kernel.  B=9000 -> 3 grid steps at tile_b=4096 (>= 2 tiles so both
    # v7x TensorCores get work) and exercises lane padding.
    B = 9000
    eps = 1e-10
    conf = jax.random.uniform(k_conf, (B,), jnp.float32, 0.01, 0.99)
    log_odds = jnp.log((conf + eps) / (1.0 - conf + eps))
    entropy = (-conf * jnp.log2(conf + eps)
               - (1.0 - conf) * jnp.log2(1.0 - conf + eps))
    xt = jnp.stack([conf, entropy, log_odds], axis=0).astype(jnp.float32)  # (3, B)

    out = attacker_model_forward_t(xt, packed)
    out = jax.block_until_ready(out)

    ref = reference_forward(xt.T, params)
    assert out.shape == (B, OUT)
    # Slight slack vs 1e-5 for MXU f32 multi-pass rounding (sigmoid output scale).
    err = float(jnp.max(jnp.abs(out - ref)))
    assert err < 2e-5, f"mismatch vs pure-JAX reference: max abs err {err}"
    print("KERNEL_OK")
</pallas_src>

<mosaic_0001>
module attributes {stable_mosaic.version = 11 : i64} {
  func.func @_attacker_kernel(%arg0: i32, %arg1: memref<3x4096xf32, #tpu.memory_space<vmem>>, %arg2: memref<32x17xf32, #tpu.memory_space<vmem>>, %arg3: memref<1x4096xf32, #tpu.memory_space<vmem>>) attributes {dimension_semantics = [#tpu.dimension_semantics<parallel>], iteration_bounds = array<i64: 3>, scalar_prefetch = 0 : i64, scratch_operands = 0 : i64, tpu.core_type = #tpu.core_type<tc>, window_params = [{transform_indices = @transform_0, window_bounds = array<i64: 3, 4096>}, {pipeline_mode = #tpu.pipeline_mode<synchronous>, transform_indices = @transform_1, window_bounds = array<i64: 32, 17>}, {transform_indices = @transform_2, window_bounds = array<i64: 1, 4096>}]} {
    %c0 = arith.constant 0 : index
    %c0_0 = arith.constant 0 : index
    %0 = vector.load %arg1[%c0, %c0_0] : memref<3x4096xf32, #tpu.memory_space<vmem>>, vector<3x4096xf32>
    %c0_1 = arith.constant 0 : index
    %c0_2 = arith.constant 0 : index
    %1 = vector.load %arg2[%c0_1, %c0_2] : memref<32x17xf32, #tpu.memory_space<vmem>>, vector<16x3xf32>
    %c0_3 = arith.constant 0 : index
    %c3 = arith.constant 3 : index
    %2 = vector.load %arg2[%c0_3, %c3] : memref<32x17xf32, #tpu.memory_space<vmem>>, vector<16x1xf32>
    %c16 = arith.constant 16 : index
    %c0_4 = arith.constant 0 : index
    %3 = vector.load %arg2[%c16, %c0_4] : memref<32x17xf32, #tpu.memory_space<vmem>>, vector<8x16xf32>
    %c16_5 = arith.constant 16 : index
    %c16_6 = arith.constant 16 : index
    %4 = vector.load %arg2[%c16_5, %c16_6] : memref<32x17xf32, #tpu.memory_space<vmem>>, vector<8x1xf32>
    %c24 = arith.constant 24 : index
    %c0_7 = arith.constant 0 : index
    %5 = vector.load %arg2[%c24, %c0_7] : memref<32x17xf32, #tpu.memory_space<vmem>>, vector<1x8xf32>
    %c24_8 = arith.constant 24 : index
    %c8 = arith.constant 8 : index
    %6 = vector.load %arg2[%c24_8, %c8] : memref<32x17xf32, #tpu.memory_space<vmem>>, vector<1x1xf32>
    %cst = arith.constant dense<0.000000e+00> : vector<16x4096xf32>
    %7 = tpu.matmul %1, %0, %cst {dimension_numbers = #tpu.dot_dimension_numbers<[1], [0], [0], [1], [0, 0, 1, 1], [], []>} : vector<16x3xf32>, vector<3x4096xf32>, vector<16x4096xf32> -> vector<16x4096xf32>
    %8 = vector.broadcast %2 : vector<16x1xf32> to vector<16x4096xf32>
    %9 = arith.addf %7, %8 : vector<16x4096xf32>
    %cst_9 = arith.constant 0.000000e+00 : f32
    %10 = vector.broadcast %cst_9 : f32 to vector<16x4096xf32>
    %11 = arith.maximumf %9, %10 : vector<16x4096xf32>
    %cst_10 = arith.constant dense<0.000000e+00> : vector<8x4096xf32>
    %12 = tpu.matmul %3, %11, %cst_10 {dimension_numbers = #tpu.dot_dimension_numbers<[1], [0], [0], [1], [0, 0, 1, 1], [], []>} : vector<8x16xf32>, vector<16x4096xf32>, vector<8x4096xf32> -> vector<8x4096xf32>
    %13 = vector.broadcast %4 : vector<8x1xf32> to vector<8x4096xf32>
    %14 = arith.addf %12, %13 : vector<8x4096xf32>
    %cst_11 = arith.constant 0.000000e+00 : f32
    %15 = vector.broadcast %cst_11 : f32 to vector<8x4096xf32>
    %16 = arith.maximumf %14, %15 : vector<8x4096xf32>
    %cst_12 = arith.constant dense<0.000000e+00> : vector<1x4096xf32>
    %17 = tpu.matmul %5, %16, %cst_12 {dimension_numbers = #tpu.dot_dimension_numbers<[1], [0], [0], [1], [0, 0, 1, 1], [], []>} : vector<1x8xf32>, vector<8x4096xf32>, vector<1x4096xf32> -> vector<1x4096xf32>
    %18 = vector.broadcast %6 : vector<1x1xf32> to vector<1x4096xf32>
    %19 = arith.addf %17, %18 : vector<1x4096xf32>
    %20 = arith.negf %19 : vector<1x4096xf32>
    %21 = math.exp %20 : vector<1x4096xf32>
    %cst_13 = arith.constant 1.000000e+00 : f32
    %22 = vector.broadcast %cst_13 : f32 to vector<1x4096xf32>
    %23 = arith.addf %22, %21 : vector<1x4096xf32>
    %24 = arith.divf %22, %23 : vector<1x4096xf32>
    %c0_14 = arith.constant 0 : index
    %c0_15 = arith.constant 0 : index
    %25 = vector.load %arg3[%c0_14, %c0_15] : memref<1x4096xf32, #tpu.memory_space<vmem>>, vector<1x4096xf32>
    tpu.vector_store %arg3[%c0_14, %c0_15], %24 {strides = array<i32>} : memref<1x4096xf32, #tpu.memory_space<vmem>>, vector<1x4096xf32>,
    return
  }
  func.func @transform_0(%arg0: i32) -> (i32, i32) {
    %c0_i32 = arith.constant 0 : i32
    %c0_i32_0 = arith.constant 0 : i32
    return %c0_i32, %arg0 : i32, i32
  }
  func.func @transform_1(%arg0: i32) -> (i32, i32) {
    %c0_i32 = arith.constant 0 : i32
    %c0_i32_0 = arith.constant 0 : i32
    %c0_i32_1 = arith.constant 0 : i32
    return %c0_i32, %c0_i32_0 : i32, i32
  }
  func.func @transform_2(%arg0: i32) -> (i32, i32) {
    %c0_i32 = arith.constant 0 : i32
    %c0_i32_0 = arith.constant 0 : i32
    return %c0_i32, %arg0 : i32, i32
  }
}

</mosaic_0001>

<bundles_post_ra>
// kernel: tpu_custom_call.1
= control target key start
LH: loop header
LB: loop body
LE: loop exit
PB: predicated region body
PF: predicated region fallthrough
CT: control target
= control target key end

     0   :  { %7 = vsyncpa [#allocation3], 0  ;;  %s5405_s0 = inlined_call_operand.hbm [shape: f32[3,12288], index: 0, kind: input, shape index: {}]   ;;  %s5406_s1 = inlined_call_operand.vmem [shape: f32[32,17], index: 1, kind: input, shape index: {}]   ;;  %s5407_s2 = inlined_call_operand.hbm [shape: f32[1,12288], index: 2, kind: output, shape index: {}]  }
   0x1   :  { %9 = vsyncpa [#allocation3 + $0x1], 0 }
   0x2   :  { %10 = vsyncpa [#allocation4], 0 }
   0x3   :  { %12 = vsyncpa [#allocation4 + $0x1], 0  ;;  %s3759_s9 = smov 0   ;;  %s3761_s10 = smov 0  }
   0x4   :  { %s3763_s11 = smov 0   ;;  %s3765_s12 = smov 0  }
   0x5 LB: > { %s3780_s13 = sadd.s32 4294967295, %s3739_s12   ;;  %s3256_s14 = sadd.s32 4294967294, %s3739_s12   ;;  %s3739_s12 = sphi %s3765_s12, %s5545_s12   ;;  %s3735_s11 = sphi %s3763_s11, %s5544_s11   ;;  %s3731_s10 = sphi %s3761_s10, %s5543_s10   ;;  %s3727_s9 = sphi %s3759_s9, %s5542_s9  }
   0x6   : > { %s3784_s15 = sadd.s32 1, %s3739_s12   ;;  %s25_s16 = sadd.s32 1, %s3735_s11 }
   0x7   : > { %s22_s17 = ssub.s32 %s3739_s12, %s3784_s15  ;;  %p32_p0 = scmp.ne.s32.totalorder %s3735_s11, %s3731_s10 }
   0x8   : > { %p23_p1 = scmp.eq.s32.totalorder %s22_s17, 0  ;;  %p33_p2 = scmp.eq.s32.totalorder %s3739_s12, 0 }
   0x9   : > { %p38_p3 = scmp.ne.s32.totalorder %s3731_s10, %s3727_s9  ;;  %p39_p4 = scmp.eq.s32.totalorder %s3780_s13, 0 }
   0xa   : > { %s3796_s18 = scalar_select %p23_p1, %s3735_s11, %s25_s16  }
   0xb   : > { %p3798_p5 = por %p33_p2, %p32_p0  ;;  %p3802_p6 = por %p39_p4, %p38_p3 }
   0xc   : > { %p83_p7 = scmp.eq.s32.totalorder %s3780_s13, 2  ;;  %p89_p8 = scmp.eq.s32.totalorder %s3256_s14, 2 }
   0xd   : > { %p3474_p9 = scmp.lt.s32.totalorder %s3739_s12, 3  ;;  %s112_s23 = sand.u32 1, %s3735_s11  }
   0xe   : > { %p3808_p10 = por %p83_p7, %p32_p0  ;;  %p3812_p11 = por %p89_p8, %p38_p3 }
   0xf   : > { %s3461_s24 = sshll.u32 %s3739_s12, 7  ;;  %s3259_s25 = sshll.u32 %s112_s23, 7 }
  0x10   : > { %s121_s28 = scalar_lea.hbm %s5405_s0, %s3461_s24  ;;  %s116_s30 = scalar_lea.vmem [#allocation2], %s3259_s25 }
  0x11   : > { %s123_s29 = sshll.u32 %s121_s28, 4  ;;  %s125_s3 = sshll.u32 %s116_s30, 4  ;;  %s124_s29 = int_to_ptr.hbm [resolvable:$true] %s123_s29  ;;  %s126_s3 = int_to_ptr.vmem [resolvable:$true] %s125_s3 }
  0x12   : > { %p3823_p12 = pnand %p3474_p9, %p3798_p5  ;;  %p3262_p13 = scmp.ge.s32.totalorder %s3739_s12, 1 }
  0x13   : > { %p130_p0 = scmp.lt.s32.totalorder %s3739_s12, 4  ;;  %s113_s5 = scalar_lea.sflag [#allocation3], %s112_s23 }
  0x14   : > { %s3643_s6 = sshra.s32 %s124_s29, 4  ;;  %p3647_p2 = pneg %p3823_p12  ;;  %s3644_s6 = int_to_ptr.hbm [resolvable:$true] %s3643_s6 }
  0x15   : > { %s3645_s7 = scalar_lea.hbm %s3644_s6, 128  ;;  %s3650_s16 = scalar_lea.hbm %s5405_s0, 384 }
  0x16   : > { %p3646_p1 = scmp.ne.s32.totalorder %s3644_s6, %s3645_s7  ;;  %p3651_p5 = scmp.lt.s32.totalorder %s3644_s6, %s5405_s0 }
  0x17   : > { %p3652_p7 = scmp.lt.s32.totalorder %s3650_s16, %s3645_s7 }
  0x18   : > { %p3648_p3 = pnand %p3647_p2, %p3646_p1 }
  0x19   : > { %p3653_p8 = por %p3652_p7, %p3651_p5 }
  0x1a   : > { %p3649_p4 = pneg %p3648_p3 }
  0x1c   : > { %p3654_p9 = pnand %p3653_p8, %p3649_p4 }
  0x1e   : > { %3657 = shalt.err (!%p3654_p9)
}
  0x1f   : > { %3469 = dma.hbm_to_vmem [thread:$0]  (!%p3823_p12), %s124_s29, 2048, %s126_s3, %s113_s5  }
  0x20   : > { %p131_p1 = pnand %p3262_p13, %p130_p0 }
  0x21   : > { %s3844_s23 = sand.u32 (!%p131_p1), 1, %s3731_s10  }
  0x22   : > { %134 = sbr.rel (%p131_p1) target bundleno = 645 (0x285), region = 28  ;;  %s3263_s24 = sshll.u32 (!%p131_p1), %s3844_s23, 7 }
  0x23   : > { %s137_s25 = scalar_lea.sflag (!%p131_p1), [#allocation3], %s3844_s23  ;;  %s3848_s26 = scalar_lea.vmem (!%p131_p1), [#allocation2], %s3263_s24 }
  0x27   : > { %3718 = dma.done.wait (%p3802_p6), %s137_s25, 2048  }
  0x28   : > { %3720 = vsyncadd (%p3802_p6), %s137_s25, 4294965248  ;;  %v3741_v0 = vmov 3   ;;  %v164_v1 = vld [vmem:[%s3848_s26] sm:$0x77]  ;;  %v165_v2 = vld [vmem:[%s3848_s26 + $0x8] sm:$0x77] }
  0x29   : > { %3511 = vset.pattern.permute.xlu0 %v3741_v0  ;;  %210 = vst [vmem:[#allocation1] ss:$2 sm:$0xff] %v164_v1  ;;  %v3859_v3 = vld [vmem:[%s5406_s1 + $0x8] sm:$0xff]  ;;  %v167_v4 = vld [vmem:[%s3848_s26 + $0x18] sm:$0x77]  ;;  %vm266_vm0 = vcmask 1042432  }
  0x2a   : > { %212 = vst [vmem:[#allocation1 + $0x10] ss:$2 sm:$0xff] %v165_v2  ;;  %191 = vperm.xlu0 %3511, %v3859_v3   ;;  %v166_v5 = vld [vmem:[%s3848_s26 + $0x10] sm:$0x77]  ;;  %v168_v6 = vld [vmem:[%s3848_s26 + $0x20] sm:$0x77] }
  0x2b   : > { %216 = vst [vmem:[#allocation1 + $0x30] ss:$2 sm:$0xff] %v167_v4  ;;  %v169_v7 = vld [vmem:[%s3848_s26 + $0x28] sm:$0x77]  ;;  %v3869_v8 = vld [vmem:[%s5406_s1] sm:$0xff]  ;;  %vm261_vm1 = vcmask 23552  }
  0x2c   : > { %214 = vst [vmem:[#allocation1 + $0x20] ss:$2 sm:$0xff] %v166_v5  ;;  %v171_v9 = vld [vmem:[%s3848_s26 + $0x38] sm:$0x77]  ;;  %v170_v13 = vld [vmem:[%s3848_s26 + $0x30] sm:$0x77] }
  0x2d   : > { %v172_v19 = vld [vmem:[%s3848_s26 + $0x40] sm:$0x77]  ;;  %v173_v20 = vld [vmem:[%s3848_s26 + $0x48] sm:$0x77]  ;;  %v175_v23 = vld [vmem:[%s3848_s26 + $0x58] sm:$0x77] }
  0x2e   : > { %v174_v28 = vld [vmem:[%s3848_s26 + $0x50] sm:$0x77]  ;;  %v177_v31 = vld [vmem:[%s3848_s26 + $0x68] sm:$0x77]  ;;  %v176_v34 = vld [vmem:[%s3848_s26 + $0x60] sm:$0x77] }
  0x2f   : > { %v179_v37 = vld [vmem:[%s3848_s26 + $0x78] sm:$0x77]  ;;  %v178_v40 = vld [vmem:[%s3848_s26 + $0x70] sm:$0x77]  ;;  %vm1136_vm2 = vcmask 130048   ;;  %vm1816_vm3 = vcmask 64512  }
  0x30   : > { %v217_v10 = vld.sshfl [vmem:[#allocation1] sm:$0xff pattern:$0x75316420]  ;;  %v218_v11 = vld.sshfl [vmem:[#allocation1 + $0x8] sm:$0xff pattern:$0x75316420] }
  0x31   : > { %3265 = vmatpush.msk.msra.mxu0 %vm266_vm0, %v217_v10  ;;  %225 = vst [vmem:[#allocation1] ss:$2 sm:$0xff] %v168_v6  ;;  %3268 = vmatpush.msk.msra.mxu1 %vm266_vm0, %v218_v11  ;;  %v219_v12 = vld.sshfl [vmem:[#allocation1 + $0x10] sm:$0xff pattern:$0x75316420]  ;;  %s3264_s6 = sshll.u32 %s3844_s23, 5 }
  0x32   : > { %3271 = vmatpush.msk.msra.mxu2 %vm266_vm0, %v219_v12  ;;  %v220_v14 = vld.sshfl [vmem:[#allocation1 + $0x18] sm:$0xff pattern:$0x75316420]  ;;  %3266 = vmatmul.msk.f32.vlgmr.msra.gmra.mxu0 %vm261_vm1, %v3869_v8  ;;  %v223_v15 = vld.sshfl [vmem:[#allocation1 + $0x30] sm:$0xff pattern:$0x75316420] }
  0x33   : > { %226 = vst [vmem:[#allocation1 + $0x10] ss:$2 sm:$0xff] %v169_v7  ;;  %3274 = vmatpush.msk.msra.mxu3 %vm266_vm0, %v220_v14  ;;  %3269 = vmatmul.msk.f32.vlgmr.msra.gmra.mxu1 %vm261_vm1, %v3869_v8  ;;  %v224_v16 = vld.sshfl [vmem:[#allocation1 + $0x38] sm:$0xff pattern:$0x75316420]  ;;  %s3458_s7 = sshll.u32 %s3780_s13, 5 }
  0x34   : > { %3272 = vmatmul.msk.f32.vlgmr.msra.gmra.mxu2 %vm261_vm1, %v3869_v8  ;;  %3275 = vmatmul.msk.f32.vlgmr.msra.gmra.mxu3 %vm261_vm1, %v3869_v8  ;;  %228 = vst [vmem:[#allocation1 + $0x30] ss:$2 sm:$0xff] %v171_v9  ;;  %v221_v17 = vld.sshfl [vmem:[#allocation1 + $0x20] sm:$0xff pattern:$0x75316420]  ;;  %s3181_s14 = scalar_lea.hbm %s5407_s2, %s3458_s7  ;;  %s161_s16 = scalar_lea.vmem [#allocation5], %s3264_s6 }
  0x35   : > { %3283 = vmatpush.msk.msrb.mxu2 %vm266_vm0, %v223_v15  ;;  %3286 = vmatpush.msk.msrb.mxu3 %vm266_vm0, %v224_v16  ;;  %v222_v18 = vld.sshfl [vmem:[#allocation1 + $0x28] sm:$0xff pattern:$0x75316420]  ;;  %s3183_s17 = sshll.u32 %s161_s16, 4  ;;  %s3185_s19 = sshll.u32 %s3181_s14, 4  ;;  %s3184_s17 = int_to_ptr.vmem [resolvable:$true] %s3183_s17  ;;  %s3186_s19 = int_to_ptr.hbm [resolvable:$true] %s3185_s19 }
  0x36   : > { %3277 = vmatpush.msk.msrb.mxu0 %vm266_vm0, %v221_v17  ;;  %227 = vst [vmem:[#allocation1 + $0x20] ss:$2 sm:$0xff] %v170_v13  ;;  %3280 = vmatpush.msk.msrb.mxu1 %vm266_vm0, %v222_v18  ;;  %v4057_v13 = vld [vmem:[%s5406_s1 + $0x10] sm:$0xff]  ;;  %s3171_s24 = scalar_lea.sflag [#allocation4], %s3844_s23  ;;  %s3687_s25 = sshra.s32 %s3186_s19, 4  ;;  %s3688_s25 = int_to_ptr.hbm [resolvable:$true] %s3687_s25 }
  0x37   : > { %186 = vperm.xlu0 %3511, %v3869_v8   ;;  %s3689_s26 = scalar_lea.hbm %s3688_s25, 32  ;;  %s3693_s20 = scalar_lea.hbm %s5407_s2, 96 }
  0x38   : > { %v229_v21 = vld.sshfl [vmem:[#allocation1] sm:$0xff pattern:$0x75316420]  ;;  %v230_v22 = vld.sshfl [vmem:[#allocation1 + $0x8] sm:$0xff pattern:$0x75316420]  ;;  %p3690_p6 = scmp.ne.s32.totalorder %s3688_s25, %s3689_s26  ;;  %p3694_p0 = scmp.lt.s32.totalorder %s3688_s25, %s5407_s2 }
  0x39   : > { %3289 = vmatpush.msk.msra.mxu0 %vm266_vm0, %v229_v21  ;;  %237 = vst [vmem:[#allocation1] ss:$2 sm:$0xff] %v172_v19  ;;  %3292 = vmatpush.msk.msra.mxu1 %vm266_vm0, %v230_v22  ;;  %p3695_p2 = scmp.lt.s32.totalorder %s3693_s20, %s3689_s26 }
  0x3a   : > { %3267 = vmatmul.msk.f32.gmra.mxu0 %vm261_vm1, %v3859_v3  ;;  %v231_v24 = vld.sshfl [vmem:[#allocation1 + $0x10] sm:$0xff pattern:$0x75316420]  ;;  %v232_v25 = vld.sshfl [vmem:[#allocation1 + $0x18] sm:$0xff pattern:$0x75316420]  ;;  %p3691_p12 = pnand %p3690_p6, %p3808_p10 }
  0x3b   : > { %3270 = vmatmul.msk.f32.gmra.mxu1 %vm261_vm1, %v3859_v3  ;;  %3295 = vmatpush.msk.msra.mxu2 %vm266_vm0, %v231_v24  ;;  %238 = vst [vmem:[#allocation1 + $0x10] ss:$2 sm:$0xff] %v173_v20  ;;  %v235_v26 = vld.sshfl [vmem:[#allocation1 + $0x30] sm:$0xff pattern:$0x75316420]  ;;  %p3696_p3 = por %p3695_p2, %p3694_p0 }
  0x3c   : > { %3273 = vmatmul.msk.f32.gmra.mxu2 %vm261_vm1, %v3859_v3  ;;  %3276 = vmatmul.msk.f32.gmra.mxu3 %vm261_vm1, %v3859_v3  ;;  %v236_v27 = vld.sshfl [vmem:[#allocation1 + $0x38] sm:$0xff pattern:$0x75316420]  ;;  %p3692_p13 = pneg %p3691_p12 }
  0x3d   : > { %3298 = vmatpush.msk.msra.mxu3 %vm266_vm0, %v232_v25  ;;  %240 = vst [vmem:[#allocation1 + $0x30] ss:$2 sm:$0xff] %v175_v23  ;;  %v233_v29 = vld.sshfl [vmem:[#allocation1 + $0x20] sm:$0xff pattern:$0x75316420] }
  0x3e   : > { %v234_v30 = vld.sshfl [vmem:[#allocation1 + $0x28] sm:$0xff pattern:$0x75316420]  ;;  %p3697_p4 = pnand %p3696_p3, %p3692_p13 }
  0x3f   : > { %239 = vst [vmem:[#allocation1 + $0x20] ss:$2 sm:$0xff] %v174_v28 }
  0x40   : > { %v241_v35 = vld.sshfl [vmem:[#allocation1] sm:$0xff pattern:$0x75316420]  ;;  %v242_v36 = vld.sshfl [vmem:[#allocation1 + $0x8] sm:$0xff pattern:$0x75316420] }
  0x41   : > { %249 = vst [vmem:[#allocation1] ss:$2 sm:$0xff] %v176_v34 }
  0x42   : > { %3278 = vmatmul.msk.f32.vlgmr.msrb.gmra.mxu0 %vm261_vm1, %v3869_v8  ;;  %v243_v32 = vld.sshfl [vmem:[#allocation1 + $0x10] sm:$0xff pattern:$0x75316420]  ;;  %v244_v33 = vld.sshfl [vmem:[#allocation1 + $0x18] sm:$0xff pattern:$0x75316420] }
  0x43   : > { %3281 = vmatmul.msk.f32.vlgmr.msrb.gmra.mxu1 %vm261_vm1, %v3869_v8  ;;  %3301 = vmatpush.msk.msrb.mxu0 %vm266_vm0, %v233_v29  ;;  %250 = vst [vmem:[#allocation1 + $0x10] ss:$2 sm:$0xff] %v177_v31 }
  0x44   : > { %3284 = vmatmul.msk.f32.vlgmr.msrb.gmra.mxu2 %vm261_vm1, %v3869_v8  ;;  %3287 = vmatmul.msk.f32.vlgmr.msrb.gmra.mxu3 %vm261_vm1, %v3869_v8  ;;  %v247_v38 = vld.sshfl [vmem:[#allocation1 + $0x30] sm:$0xff pattern:$0x75316420]  ;;  %v248_v39 = vld.sshfl [vmem:[#allocation1 + $0x38] sm:$0xff pattern:$0x75316420] }
  0x45   : > { %3307 = vmatpush.msk.msrb.mxu2 %vm266_vm0, %v235_v26  ;;  %3310 = vmatpush.msk.msrb.mxu3 %vm266_vm0, %v236_v27  ;;  %252 = vst [vmem:[#allocation1 + $0x30] ss:$2 sm:$0xff] %v179_v37 }
  0x46   : > { %3304 = vmatpush.msk.msrb.mxu1 %vm266_vm0, %v234_v30  ;;  %v245_v41 = vld.sshfl [vmem:[#allocation1 + $0x20] sm:$0xff pattern:$0x75316420]  ;;  %v246_v42 = vld.sshfl [vmem:[#allocation1 + $0x28] sm:$0xff pattern:$0x75316420] }
  0x47   : > { %251 = vst [vmem:[#allocation1 + $0x20] ss:$2 sm:$0xff] %v178_v40 }
  0x48   : > { %v253_v43 = vld.sshfl [vmem:[#allocation1] sm:$0xff pattern:$0x75316420]  ;;  %v254_v46 = vld.sshfl [vmem:[#allocation1 + $0x8] sm:$0xff pattern:$0x75316420] }
  0x4a   : > { %3279 = vmatmul.msk.f32.gmra.mxu0 %vm261_vm1, %v3859_v3  ;;  %v255_v44 = vld.sshfl [vmem:[#allocation1 + $0x10] sm:$0xff pattern:$0x75316420]  ;;  %v256_v45 = vld.sshfl [vmem:[#allocation1 + $0x18] sm:$0xff pattern:$0x75316420] }
  0x4b   : > { %3282 = vmatmul.msk.f32.gmra.mxu1 %vm261_vm1, %v3859_v3 }
  0x4c   : > { %3285 = vmatmul.msk.f32.gmra.mxu2 %vm261_vm1, %v3859_v3  ;;  %3288 = vmatmul.msk.f32.gmra.mxu3 %vm261_vm1, %v3859_v3  ;;  %v259_v48 = vld.sshfl [vmem:[#allocation1 + $0x30] sm:$0xff pattern:$0x75316420]  ;;  %v260_v49 = vld.sshfl [vmem:[#allocation1 + $0x38] sm:$0xff pattern:$0x75316420] }
  0x4e   : > { %v257_v47 = vld.sshfl [vmem:[#allocation1 + $0x20] sm:$0xff pattern:$0x75316420]  ;;  %v258_v50 = vld.sshfl [vmem:[#allocation1 + $0x28] sm:$0xff pattern:$0x75316420] }
  0x52   : > { %3290 = vmatmul.msk.f32.vlgmr.msra.gmra.mxu0 %vm261_vm1, %v3869_v8 }
  0x53   : > { %3293 = vmatmul.msk.f32.vlgmr.msra.gmra.mxu1 %vm261_vm1, %v3869_v8  ;;  %3313 = vmatpush.msk.msra.mxu0 %vm266_vm0, %v241_v35 }
  0x54   : > { %3296 = vmatmul.msk.f32.vlgmr.msra.gmra.mxu2 %vm261_vm1, %v3869_v8  ;;  %3299 = vmatmul.msk.f32.vlgmr.msra.gmra.mxu3 %vm261_vm1, %v3869_v8 }
  0x55   : > { %3319 = vmatpush.msk.msra.mxu2 %vm266_vm0, %v243_v32  ;;  %3322 = vmatpush.msk.msra.mxu3 %vm266_vm0, %v244_v33 }
  0x56   : > { %3316 = vmatpush.msk.msra.mxu1 %vm266_vm0, %v242_v36 }
  0x5a   : > { %3291 = vmatmul.msk.f32.gmra.mxu0 %vm261_vm1, %v3859_v3 }
  0x5b   : > { %3294 = vmatmul.msk.f32.gmra.mxu1 %vm261_vm1, %v3859_v3 }
  0x5c   : > { %3297 = vmatmul.msk.f32.gmra.mxu2 %vm261_vm1, %v3859_v3  ;;  %3300 = vmatmul.msk.f32.gmra.mxu3 %vm261_vm1, %v3859_v3 }
  0x62   : > { %3302 = vmatmul.msk.f32.vlgmr.msrb.gmra.mxu0 %vm261_vm1, %v3869_v8 }
  0x63   : > { %3305 = vmatmul.msk.f32.vlgmr.msrb.gmra.mxu1 %vm261_vm1, %v3869_v8  ;;  %3325 = vmatpush.msk.msrb.mxu0 %vm266_vm0, %v245_v41 }
  0x64   : > { %3308 = vmatmul.msk.f32.vlgmr.msrb.gmra.mxu2 %vm261_vm1, %v3869_v8  ;;  %3311 = vmatmul.msk.f32.vlgmr.msrb.gmra.mxu3 %vm261_vm1, %v3869_v8 }
  0x65   : > { %3331 = vmatpush.msk.msrb.mxu2 %vm266_vm0, %v247_v38  ;;  %3334 = vmatpush.msk.msrb.mxu3 %vm266_vm0, %v248_v39 }
  0x66   : > { %3328 = vmatpush.msk.msrb.mxu1 %vm266_vm0, %v246_v42 }
  0x6a   : > { %3303 = vmatmul.msk.f32.gmra.mxu0 %vm261_vm1, %v3859_v3 }
  0x6b   : > { %3306 = vmatmul.msk.f32.gmra.mxu1 %vm261_vm1, %v3859_v3 }
  0x6c   : > { %3309 = vmatmul.msk.f32.gmra.mxu2 %vm261_vm1, %v3859_v3  ;;  %3312 = vmatmul.msk.f32.gmra.mxu3 %vm261_vm1, %v3859_v3 }
  0x72   : > { %3314 = vmatmul.msk.f32.vlgmr.msra.gmra.mxu0 %vm261_vm1, %v3869_v8 }
  0x73   : > { %3317 = vmatmul.msk.f32.vlgmr.msra.gmra.mxu1 %vm261_vm1, %v3869_v8  ;;  %3337 = vmatpush.msk.msra.mxu0 %vm266_vm0, %v253_v43 }
  0x74   : > { %3320 = vmatmul.msk.f32.vlgmr.msra.gmra.mxu2 %vm261_vm1, %v3869_v8  ;;  %3323 = vmatmul.msk.f32.vlgmr.msra.gmra.mxu3 %vm261_vm1, %v3869_v8 }
  0x75   : > { %3343 = vmatpush.msk.msra.mxu2 %vm266_vm0, %v255_v44  ;;  %3346 = vmatpush.msk.msra.mxu3 %vm266_vm0, %v256_v45 }
  0x76   : > { %3340 = vmatpush.msk.msra.mxu1 %vm266_vm0, %v254_v46  ;;  %v3742_v46 = vmov 16  }
  0x77   : > { %3512 = vset.pattern.permute.xlu1 %v3742_v46 }
  0x78   : > { %1133 = vperm.xlu1 %3512, %v4057_v13  }
  0x7a   : > { %3315 = vmatmul.msk.f32.gmra.mxu0 %vm261_vm1, %v3859_v3 }
  0x7b   : > { %3318 = vmatmul.msk.f32.gmra.mxu1 %vm261_vm1, %v3859_v3 }
  0x7c   : > { %3321 = vmatmul.msk.f32.gmra.mxu2 %vm261_vm1, %v3859_v3  ;;  %3324 = vmatmul.msk.f32.gmra.mxu3 %vm261_vm1, %v3859_v3 }
  0x82   : > { %3326 = vmatmul.msk.f32.vlgmr.msrb.gmra.mxu0 %vm261_vm1, %v3869_v8 }
  0x83   : > { %3329 = vmatmul.msk.f32.vlgmr.msrb.gmra.mxu1 %vm261_vm1, %v3869_v8  ;;  %3349 = vmatpush.msk.msrb.mxu0 %vm266_vm0, %v257_v47 }
  0x84   : > { %3332 = vmatmul.msk.f32.vlgmr.msrb.gmra.mxu2 %vm261_vm1, %v3869_v8  ;;  %3335 = vmatmul.msk.f32.vlgmr.msrb.gmra.mxu3 %vm261_vm1, %v3869_v8 }
  0x85   : > { %3355 = vmatpush.msk.msrb.mxu2 %vm266_vm0, %v259_v48  ;;  %3358 = vmatpush.msk.msrb.mxu3 %vm266_vm0, %v260_v49 }
  0x86   : > { %3352 = vmatpush.msk.msrb.mxu1 %vm266_vm0, %v258_v50 }
  0x8a   : > { %3327 = vmatmul.msk.f32.gmra.mxu0 %vm261_vm1, %v3859_v3 }
  0x8b   : > { %3330 = vmatmul.msk.f32.gmra.mxu1 %vm261_vm1, %v3859_v3 }
  0x8c   : > { %3333 = vmatmul.msk.f32.gmra.mxu2 %vm261_vm1, %v3859_v3  ;;  %3336 = vmatmul.msk.f32.gmra.mxu3 %vm261_vm1, %v3859_v3 }
  0x92   : > { %3338 = vmatmul.msk.f32.vlgmr.msra.gmra.mxu0 %vm261_vm1, %v3869_v8 }
  0x93   : > { %3341 = vmatmul.msk.f32.vlgmr.msra.gmra.mxu1 %vm261_vm1, %v3869_v8 }
  0x94   : > { %3344 = vmatmul.msk.f32.vlgmr.msra.gmra.mxu2 %vm261_vm1, %v3869_v8  ;;  %3347 = vmatmul.msk.f32.vlgmr.msra.gmra.mxu3 %vm261_vm1, %v3869_v8 }
  0x9a   : > { %3339 = vmatmul.msk.f32.gmra.mxu0 %vm261_vm1, %v3859_v3 }
  0x9b   : > { %3342 = vmatmul.msk.f32.gmra.mxu1 %vm261_vm1, %v3859_v3 }
  0x9c   : > { %3345 = vmatmul.msk.f32.gmra.mxu2 %vm261_vm1, %v3859_v3  ;;  %3348 = vmatmul.msk.f32.gmra.mxu3 %vm261_vm1, %v3859_v3  ;;  %v4042_v51 = vpop.permute.xlu0 %191 }
  0xa2   : > { %3350 = vmatmul.msk.f32.vlgmr.msrb.gmra.mxu0 %vm261_vm1, %v3869_v8 }
  0xa3   : > { %3353 = vmatmul.msk.f32.vlgmr.msrb.gmra.mxu1 %vm261_vm1, %v3869_v8 }
  0xa4   : > { %3356 = vmatmul.msk.f32.vlgmr.msrb.gmra.mxu2 %vm261_vm1, %v3869_v8  ;;  %3359 = vmatmul.msk.f32.vlgmr.msrb.gmra.mxu3 %vm261_vm1, %v3869_v8 }
  0xa9   : > { %v4044_v54 = vpop.permute.xlu0 %186 }
  0xaa   : > { %3351 = vmatmul.msk.f32.gmra.mxu0 %vm261_vm1, %v3859_v3 }
  0xab   : > { %3354 = vmatmul.msk.f32.gmra.mxu1 %vm261_vm1, %v3859_v3 }
  0xac   : > { %3357 = vmatmul.msk.f32.gmra.mxu2 %vm261_vm1, %v3859_v3  ;;  %3360 = vmatmul.msk.f32.gmra.mxu3 %vm261_vm1, %v3859_v3 }
  0xaf   : > { %v348_v52 = vpop.f32.mrf.mxu0 }
  0xb0   : > { %v371_v53 = vpop.f32.mrf.mxu1  ;;  %v349_v57 = vadd.f32 %v348_v52, %v4044_v54 }
  0xb1   : > { %v372_v58 = vadd.f32 %v371_v53, %v4044_v54 }
  0xb2   : > { %v1067_v1 = vmax.f32 %v349_v57, 0.0 }
  0xb3   : > { %v1068_v2 = vmax.f32 %v372_v58, 0.0 }
  0xb7   : > { %v394_v55 = vpop.f32.mrf.mxu2  ;;  %v417_v56 = vpop.f32.mrf.mxu3 }
  0xb8   : > { %v351_v59 = vpop.f32.mrf.mxu0  ;;  %v374_v60 = vpop.f32.mrf.mxu1  ;;  %v395_v5 = vadd.f32 %v394_v55, %v4044_v54  ;;  %v418_v6 = vadd.f32 %v417_v56, %v4044_v54 }
  0xb9   : > { %v352_v61 = vadd.f32 %v351_v59, %v4042_v51  ;;  %v375_v62 = vadd.f32 %v374_v60, %v4042_v51 }
  0xba   : > { %v1069_v14 = vmax.f32 %v395_v5, 0.0  ;;  %v1070_v15 = vmax.f32 %v418_v6, 0.0 }
  0xbb   : > { %v1099_v63 = vmax.f32 %v352_v61, 0.0  ;;  %v1100_v0 = vmax.f32 %v375_v62, 0.0 }
  0xbd   : > { %1153 = vmatpush.msra.mxu0 %v1099_v63  ;;  %1173 = vmatpush.msra.mxu1 %v1100_v0 }
  0xbf   : > { %v397_v3 = vpop.f32.mrf.mxu2  ;;  %v420_v4 = vpop.f32.mrf.mxu3  ;;  %1154 = vmatpush.msra.mxu0 %v1067_v1  ;;  %1174 = vmatpush.msra.mxu1 %v1068_v2 }
  0xc0   : > { %v398_v7 = vadd.f32 %v397_v3, %v4042_v51  ;;  %v421_v8 = vadd.f32 %v420_v4, %v4042_v51  ;;  %v440_v9 = vpop.f32.mrf.mxu0  ;;  %v463_v10 = vpop.f32.mrf.mxu1  ;;  %3361 = vmatmul.msk.f32.vlgmr.msra.gmra.mxu0 %vm1136_vm2, %v4057_v13  ;;  %3362 = vmatmul.msk.f32.vlgmr.msra.gmra.mxu1 %vm1136_vm2, %v4057_v13 }
  0xc1   : > { %v441_v16 = vadd.f32 %v440_v9, %v4044_v54  ;;  %v464_v17 = vadd.f32 %v463_v10, %v4044_v54 }
  0xc2   : > { %v1101_v11 = vmax.f32 %v398_v7, 0.0  ;;  %v1102_v12 = vmax.f32 %v421_v8, 0.0 }
  0xc3   : > { %v1071_v24 = vmax.f32 %v441_v16, 0.0  ;;  %v1072_v25 = vmax.f32 %v464_v17, 0.0 }
  0xc4   : > { %1193 = vmatpush.msra.mxu2 %v1101_v11  ;;  %1213 = vmatpush.msra.mxu3 %v1102_v12 }
  0xc6   : > { %1194 = vmatpush.msra.mxu2 %v1069_v14  ;;  %1214 = vmatpush.msra.mxu3 %v1070_v15 }
  0xc7   : > { %v486_v18 = vpop.f32.mrf.mxu2  ;;  %v509_v19 = vpop.f32.mrf.mxu3  ;;  %3363 = vmatmul.msk.f32.vlgmr.msra.gmra.mxu2 %vm1136_vm2, %v4057_v13  ;;  %3364 = vmatmul.msk.f32.vlgmr.msra.gmra.mxu3 %vm1136_vm2, %v4057_v13 }
  0xc8   : > { %v443_v20 = vpop.f32.mrf.mxu0  ;;  %v466_v21 = vpop.f32.mrf.mxu1  ;;  %v487_v28 = vadd.f32 %v486_v18, %v4044_v54  ;;  %v510_v31 = vadd.f32 %v509_v19, %v4044_v54 }
  0xc9   : > { %v444_v22 = vadd.f32 %v443_v20, %v4042_v51  ;;  %v467_v23 = vadd.f32 %v466_v21, %v4042_v51 }
  0xca   : > { %v1073_v38 = vmax.f32 %v487_v28, 0.0  ;;  %v1074_v39 = vmax.f32 %v510_v31, 0.0 }
  0xcb   : > { %v1103_v26 = vmax.f32 %v444_v22, 0.0  ;;  %v1104_v27 = vmax.f32 %v467_v23, 0.0 }
  0xcd   : > { %1233 = vmatpush.msrb.mxu0 %v1103_v26  ;;  %1253 = vmatpush.msrb.mxu1 %v1104_v27 }
  0xcf   : > { %v489_v29 = vpop.f32.mrf.mxu2  ;;  %v512_v30 = vpop.f32.mrf.mxu3  ;;  %1234 = vmatpush.msrb.mxu0 %v1071_v24  ;;  %1254 = vmatpush.msrb.mxu1 %v1072_v25 }
  0xd0   : > { %v490_v32 = vadd.f32 %v489_v29, %v4042_v51  ;;  %v513_v33 = vadd.f32 %v512_v30, %v4042_v51  ;;  %v532_v34 = vpop.f32.mrf.mxu0  ;;  %v555_v35 = vpop.f32.mrf.mxu1  ;;  %3365 = vmatmul.msk.f32.vlgmr.msrb.gmra.mxu0 %vm1136_vm2, %v4057_v13  ;;  %3366 = vmatmul.msk.f32.vlgmr.msrb.gmra.mxu1 %vm1136_vm2, %v4057_v13 }
  0xd1   : > { %v533_v40 = vadd.f32 %v532_v34, %v4044_v54  ;;  %v556_v41 = vadd.f32 %v555_v35, %v4044_v54 }
  0xd2   : > { %v1105_v36 = vmax.f32 %v490_v32, 0.0  ;;  %v1106_v37 = vmax.f32 %v513_v33, 0.0 }
  0xd3   : > { %v1075_v49 = vmax.f32 %v533_v40, 0.0  ;;  %v1076_v50 = vmax.f32 %v556_v41, 0.0 }
  0xd4   : > { %1273 = vmatpush.msrb.mxu2 %v1105_v36  ;;  %1293 = vmatpush.msrb.mxu3 %v1106_v37 }
  0xd6   : > { %1274 = vmatpush.msrb.mxu2 %v1073_v38  ;;  %1294 = vmatpush.msrb.mxu3 %v1074_v39 }
  0xd7   : > { %v578_v42 = vpop.f32.mrf.mxu2  ;;  %v601_v43 = vpop.f32.mrf.mxu3  ;;  %3367 = vmatmul.msk.f32.vlgmr.msrb.gmra.mxu2 %vm1136_vm2, %v4057_v13  ;;  %3368 = vmatmul.msk.f32.vlgmr.msrb.gmra.mxu3 %vm1136_vm2, %v4057_v13 }
  0xd8   : > { %v535_v44 = vpop.f32.mrf.mxu0  ;;  %v558_v45 = vpop.f32.mrf.mxu1  ;;  %v579_v55 = vadd.f32 %v578_v42, %v4044_v54  ;;  %v602_v58 = vadd.f32 %v601_v43, %v4044_v54 }
  0xd9   : > { %v536_v47 = vadd.f32 %v535_v44, %v4042_v51  ;;  %v559_v48 = vadd.f32 %v558_v45, %v4042_v51 }
  0xda   : > { %v1077_v1 = vmax.f32 %v579_v55, 0.0  ;;  %v1078_v2 = vmax.f32 %v602_v58, 0.0 }
  0xdb   : > { %v1107_v52 = vmax.f32 %v536_v47, 0.0  ;;  %v1108_v53 = vmax.f32 %v559_v48, 0.0 }
  0xdd   : > { %1313 = vmatpush.msra.mxu0 %v1107_v52  ;;  %1333 = vmatpush.msra.mxu1 %v1108_v53 }
  0xdf   : > { %v581_v56 = vpop.f32.mrf.mxu2  ;;  %v604_v57 = vpop.f32.mrf.mxu3  ;;  %1314 = vmatpush.msra.mxu0 %v1075_v49  ;;  %1334 = vmatpush.msra.mxu1 %v1076_v50 }
  0xe0   : > { %v582_v59 = vadd.f32 %v581_v56, %v4042_v51  ;;  %v605_v60 = vadd.f32 %v604_v57, %v4042_v51  ;;  %v624_v61 = vpop.f32.mrf.mxu0  ;;  %v647_v62 = vpop.f32.mrf.mxu1  ;;  %3369 = vmatmul.msk.f32.vlgmr.msra.gmra.mxu0 %vm1136_vm2, %v4057_v13  ;;  %3370 = vmatmul.msk.f32.vlgmr.msra.gmra.mxu1 %vm1136_vm2, %v4057_v13 }
  0xe1   : > { %v625_v3 = vadd.f32 %v624_v61, %v4044_v54  ;;  %v648_v4 = vadd.f32 %v647_v62, %v4044_v54 }
  0xe2   : > { %v1109_v63 = vmax.f32 %v582_v59, 0.0  ;;  %v1110_v0 = vmax.f32 %v605_v60, 0.0 }
  0xe3   : > { %v1079_v11 = vmax.f32 %v625_v3, 0.0  ;;  %v1080_v12 = vmax.f32 %v648_v4, 0.0 }
  0xe4   : > { %1353 = vmatpush.msra.mxu2 %v1109_v63  ;;  %1373 = vmatpush.msra.mxu3 %v1110_v0 }
  0xe6   : > { %1354 = vmatpush.msra.mxu2 %v1077_v1  ;;  %1374 = vmatpush.msra.mxu3 %v1078_v2 }
  0xe7   : > { %v670_v5 = vpop.f32.mrf.mxu2  ;;  %v693_v6 = vpop.f32.mrf.mxu3  ;;  %3371 = vmatmul.msk.f32.vlgmr.msra.gmra.mxu2 %vm1136_vm2, %v4057_v13  ;;  %3372 = vmatmul.msk.f32.vlgmr.msra.gmra.mxu3 %vm1136_vm2, %v4057_v13 }
  0xe8   : > { %v627_v7 = vpop.f32.mrf.mxu0  ;;  %v650_v8 = vpop.f32.mrf.mxu1  ;;  %v671_v16 = vadd.f32 %v670_v5, %v4044_v54  ;;  %v694_v19 = vadd.f32 %v693_v6, %v4044_v54 }
  0xe9   : > { %v628_v9 = vadd.f32 %v627_v7, %v4042_v51  ;;  %v651_v10 = vadd.f32 %v650_v8, %v4042_v51 }
  0xea   : > { %v1081_v26 = vmax.f32 %v671_v16, 0.0  ;;  %v1082_v27 = vmax.f32 %v694_v19, 0.0 }
  0xeb   : > { %v1111_v14 = vmax.f32 %v628_v9, 0.0  ;;  %v1112_v15 = vmax.f32 %v651_v10, 0.0 }
  0xed   : > { %1393 = vmatpush.msrb.mxu0 %v1111_v14  ;;  %1413 = vmatpush.msrb.mxu1 %v1112_v15 }
  0xef   : > { %v673_v17 = vpop.f32.mrf.mxu2  ;;  %v696_v18 = vpop.f32.mrf.mxu3  ;;  %1394 = vmatpush.msrb.mxu0 %v1079_v11  ;;  %1414 = vmatpush.msrb.mxu1 %v1080_v12 }
  0xf0   : > { %v674_v20 = vadd.f32 %v673_v17, %v4042_v51  ;;  %v697_v21 = vadd.f32 %v696_v18, %v4042_v51  ;;  %v716_v22 = vpop.f32.mrf.mxu0  ;;  %v739_v23 = vpop.f32.mrf.mxu1  ;;  %3373 = vmatmul.msk.f32.vlgmr.msrb.gmra.mxu0 %vm1136_vm2, %v4057_v13  ;;  %3374 = vmatmul.msk.f32.vlgmr.msrb.gmra.mxu1 %vm1136_vm2, %v4057_v13 }
  0xf1   : > { %v717_v32 = vadd.f32 %v716_v22, %v4044_v54  ;;  %v740_v33 = vadd.f32 %v739_v23, %v4044_v54 }
  0xf2   : > { %v1113_v24 = vmax.f32 %v674_v20, 0.0  ;;  %v1114_v25 = vmax.f32 %v697_v21, 0.0 }
  0xf3   : > { %v1083_v38 = vmax.f32 %v717_v32, 0.0  ;;  %v1084_v39 = vmax.f32 %v740_v33, 0.0 }
  0xf4   : > { %1433 = vmatpush.msrb.mxu2 %v1113_v24  ;;  %1453 = vmatpush.msrb.mxu3 %v1114_v25 }
  0xf6   : > { %1434 = vmatpush.msrb.mxu2 %v1081_v26  ;;  %1454 = vmatpush.msrb.mxu3 %v1082_v27 }
  0xf7   : > { %v762_v28 = vpop.f32.mrf.mxu2  ;;  %v785_v29 = vpop.f32.mrf.mxu3  ;;  %3375 = vmatmul.msk.f32.vlgmr.msrb.gmra.mxu2 %vm1136_vm2, %v4057_v13  ;;  %3376 = vmatmul.msk.f32.vlgmr.msrb.gmra.mxu3 %vm1136_vm2, %v4057_v13 }
  0xf8   : > { %v719_v30 = vpop.f32.mrf.mxu0  ;;  %v742_v31 = vpop.f32.mrf.mxu1  ;;  %v763_v40 = vadd.f32 %v762_v28, %v4044_v54  ;;  %v786_v43 = vadd.f32 %v785_v29, %v4044_v54 }
  0xf9   : > { %v720_v34 = vadd.f32 %v719_v30, %v4042_v51  ;;  %v743_v35 = vadd.f32 %v742_v31, %v4042_v51 }
  0xfa   : > { %v1085_v50 = vmax.f32 %v763_v40, 0.0  ;;  %v1086_v52 = vmax.f32 %v786_v43, 0.0 }
  0xfb   : > { %v1115_v36 = vmax.f32 %v720_v34, 0.0  ;;  %v1116_v37 = vmax.f32 %v743_v35, 0.0 }
  0xfd   : > { %1473 = vmatpush.msra.mxu0 %v1115_v36  ;;  %1493 = vmatpush.msra.mxu1 %v1116_v37 }
  0xff   : > { %v765_v41 = vpop.f32.mrf.mxu2  ;;  %v788_v42 = vpop.f32.mrf.mxu3  ;;  %1474 = vmatpush.msra.mxu0 %v1083_v38  ;;  %1494 = vmatpush.msra.mxu1 %v1084_v39 }
 0x100   : > { %v766_v44 = vadd.f32 %v765_v41, %v4042_v51  ;;  %v789_v45 = vadd.f32 %v788_v42, %v4042_v51  ;;  %v808_v46 = vpop.f32.mrf.mxu0  ;;  %v831_v47 = vpop.f32.mrf.mxu1  ;;  %3377 = vmatmul.msk.f32.vlgmr.msra.gmra.mxu0 %vm1136_vm2, %v4057_v13  ;;  %3378 = vmatmul.msk.f32.vlgmr.msra.gmra.mxu1 %vm1136_vm2, %v4057_v13 }
 0x101   : > { %v809_v58 = vadd.f32 %v808_v46, %v4044_v54  ;;  %v832_v59 = vadd.f32 %v831_v47, %v4044_v54 }
 0x102   : > { %v1117_v48 = vmax.f32 %v766_v44, 0.0  ;;  %v1118_v49 = vmax.f32 %v789_v45, 0.0 }
 0x103   : > { %v1087_v0 = vmax.f32 %v809_v58, 0.0  ;;  %v1088_v1 = vmax.f32 %v832_v59, 0.0 }
 0x104   : > { %1513 = vmatpush.msra.mxu2 %v1117_v48  ;;  %1533 = vmatpush.msra.mxu3 %v1118_v49 }
 0x106   : > { %1514 = vmatpush.msra.mxu2 %v1085_v50  ;;  %1534 = vmatpush.msra.mxu3 %v1086_v52 }
 0x107   : > { %v854_v53 = vpop.f32.mrf.mxu2  ;;  %v877_v55 = vpop.f32.mrf.mxu3  ;;  %3379 = vmatmul.msk.f32.vlgmr.msra.gmra.mxu2 %vm1136_vm2, %v4057_v13  ;;  %3380 = vmatmul.msk.f32.vlgmr.msra.gmra.mxu3 %vm1136_vm2, %v4057_v13 }
 0x108   : > { %v811_v56 = vpop.f32.mrf.mxu0  ;;  %v834_v57 = vpop.f32.mrf.mxu1  ;;  %v855_v2 = vadd.f32 %v854_v53, %v4044_v54  ;;  %v878_v5 = vadd.f32 %v877_v55, %v4044_v54 }
 0x109   : > { %v812_v60 = vadd.f32 %v811_v56, %v4042_v51  ;;  %v835_v61 = vadd.f32 %v834_v57, %v4042_v51 }
 0x10a   : > { %v1089_v12 = vmax.f32 %v855_v2, 0.0  ;;  %v1090_v14 = vmax.f32 %v878_v5, 0.0 }
 0x10b   : > { %v1119_v62 = vmax.f32 %v812_v60, 0.0  ;;  %v1120_v63 = vmax.f32 %v835_v61, 0.0 }
 0x10d   : > { %1553 = vmatpush.msrb.mxu0 %v1119_v62  ;;  %1573 = vmatpush.msrb.mxu1 %v1120_v63 }
 0x10f   : > { %v857_v3 = vpop.f32.mrf.mxu2  ;;  %v880_v4 = vpop.f32.mrf.mxu3  ;;  %1554 = vmatpush.msrb.mxu0 %v1087_v0  ;;  %1574 = vmatpush.msrb.mxu1 %v1088_v1 }
 0x110   : > { %v858_v6 = vadd.f32 %v857_v3, %v4042_v51  ;;  %v881_v7 = vadd.f32 %v880_v4, %v4042_v51  ;;  %v900_v8 = vpop.f32.mrf.mxu0  ;;  %v923_v9 = vpop.f32.mrf.mxu1  ;;  %3381 = vmatmul.msk.f32.vlgmr.msrb.gmra.mxu0 %vm1136_vm2, %v4057_v13  ;;  %3382 = vmatmul.msk.f32.vlgmr.msrb.gmra.mxu1 %vm1136_vm2, %v4057_v13 }
 0x111   : > { %v901_v19 = vadd.f32 %v900_v8, %v4044_v54  ;;  %v924_v20 = vadd.f32 %v923_v9, %v4044_v54  ;;  %v4180_v1 = vpop.permute.xlu1 %1133 }
 0x112   : > { %v1121_v10 = vmax.f32 %v858_v6, 0.0  ;;  %v1122_v11 = vmax.f32 %v881_v7, 0.0 }
 0x113   : > { %v1091_v25 = vmax.f32 %v901_v19, 0.0  ;;  %v1092_v26 = vmax.f32 %v924_v20, 0.0 }
 0x114   : > { %1593 = vmatpush.msrb.mxu2 %v1121_v10  ;;  %1613 = vmatpush.msrb.mxu3 %v1122_v11  ;;  %v4189_v11 = vld [vmem:[%s5406_s1 + $0x18] sm:$0x1] }
 0x116   : > { %1594 = vmatpush.msrb.mxu2 %v1089_v12  ;;  %1614 = vmatpush.msrb.mxu3 %v1090_v14 }
 0x117   : > { %v946_v15 = vpop.f32.mrf.mxu2  ;;  %v969_v16 = vpop.f32.mrf.mxu3  ;;  %3383 = vmatmul.msk.f32.vlgmr.msrb.gmra.mxu2 %vm1136_vm2, %v4057_v13  ;;  %3384 = vmatmul.msk.f32.vlgmr.msrb.gmra.mxu3 %vm1136_vm2, %v4057_v13 }
 0x118   : > { %v903_v17 = vpop.f32.mrf.mxu0  ;;  %v926_v18 = vpop.f32.mrf.mxu1  ;;  %v947_v27 = vadd.f32 %v946_v15, %v4044_v54  ;;  %v970_v30 = vadd.f32 %v969_v16, %v4044_v54 }
 0x119   : > { %v904_v21 = vadd.f32 %v903_v17, %v4042_v51  ;;  %v927_v22 = vadd.f32 %v926_v18, %v4042_v51 }
 0x11a   : > { %v1093_v37 = vmax.f32 %v947_v27, 0.0  ;;  %v1094_v38 = vmax.f32 %v970_v30, 0.0 }
 0x11b   : > { %v1123_v23 = vmax.f32 %v904_v21, 0.0  ;;  %v1124_v24 = vmax.f32 %v927_v22, 0.0 }
 0x11d   : > { %1633 = vmatpush.msra.mxu0 %v1123_v23  ;;  %1653 = vmatpush.msra.mxu1 %v1124_v24 }
 0x11f   : > { %v949_v28 = vpop.f32.mrf.mxu2  ;;  %v972_v29 = vpop.f32.mrf.mxu3  ;;  %1634 = vmatpush.msra.mxu0 %v1091_v25  ;;  %1654 = vmatpush.msra.mxu1 %v1092_v26 }
 0x120   : > { %v950_v31 = vadd.f32 %v949_v28, %v4042_v51  ;;  %v973_v32 = vadd.f32 %v972_v29, %v4042_v51  ;;  %v992_v33 = vpop.f32.mrf.mxu0  ;;  %v1015_v34 = vpop.f32.mrf.mxu1  ;;  %3385 = vmatmul.msk.f32.vlgmr.msra.gmra.mxu0 %vm1136_vm2, %v4057_v13  ;;  %3386 = vmatmul.msk.f32.vlgmr.msra.gmra.mxu1 %vm1136_vm2, %v4057_v13  ;;  %v3743_v29 = vmov 8  }
 0x121   : > { %v993_v43 = vadd.f32 %v992_v33, %v4044_v54  ;;  %v1016_v44 = vadd.f32 %v1015_v34, %v4044_v54  ;;  %3513 = vset.pattern.permute.xlu1 %v3743_v29  ;;  %3514 = vset.pattern.permute.xlu0 %v3743_v29 }
 0x122   : > { %v1125_v35 = vmax.f32 %v950_v31, 0.0  ;;  %v1126_v36 = vmax.f32 %v973_v32, 0.0  ;;  %1813 = vperm.xlu1 %3513, %v4189_v11  }
 0x123   : > { %v1095_v49 = vmax.f32 %v993_v43, 0.0  ;;  %v1096_v50 = vmax.f32 %v1016_v44, 0.0 }
 0x124   : > { %1673 = vmatpush.msra.mxu2 %v1125_v35  ;;  %1693 = vmatpush.msra.mxu3 %v1126_v36 }
 0x126   : > { %1674 = vmatpush.msra.mxu2 %v1093_v37  ;;  %1694 = vmatpush.msra.mxu3 %v1094_v38 }
 0x127   : > { %v1038_v39 = vpop.f32.mrf.mxu2  ;;  %v1061_v40 = vpop.f32.mrf.mxu3  ;;  %3387 = vmatmul.msk.f32.vlgmr.msra.gmra.mxu2 %vm1136_vm2, %v4057_v13  ;;  %3388 = vmatmul.msk.f32.vlgmr.msra.gmra.mxu3 %vm1136_vm2, %v4057_v13 }
 0x128   : > { %v995_v41 = vpop.f32.mrf.mxu0  ;;  %v1018_v42 = vpop.f32.mrf.mxu1  ;;  %v1039_v52 = vadd.f32 %v1038_v39, %v4044_v54  ;;  %v1062_v56 = vadd.f32 %v1061_v40, %v4044_v54 }
 0x129   : > { %v996_v45 = vadd.f32 %v995_v41, %v4042_v51  ;;  %v1019_v46 = vadd.f32 %v1018_v42, %v4042_v51 }
 0x12a   : > { %v1097_v61 = vmax.f32 %v1039_v52, 0.0  ;;  %v1098_v62 = vmax.f32 %v1062_v56, 0.0 }
 0x12b   : > { %v1127_v47 = vmax.f32 %v996_v45, 0.0  ;;  %v1128_v48 = vmax.f32 %v1019_v46, 0.0 }
 0x12d   : > { %1713 = vmatpush.msrb.mxu0 %v1127_v47  ;;  %1733 = vmatpush.msrb.mxu1 %v1128_v48 }
 0x12f   : > { %v1041_v53 = vpop.f32.mrf.mxu2  ;;  %v1064_v55 = vpop.f32.mrf.mxu3  ;;  %1714 = vmatpush.msrb.mxu0 %v1095_v49  ;;  %1734 = vmatpush.msrb.mxu1 %v1096_v50 }
 0x130   : > { %v1042_v57 = vadd.f32 %v1041_v53, %v4042_v51  ;;  %v1065_v58 = vadd.f32 %v1064_v55, %v4042_v51  ;;  %3389 = vmatmul.msk.f32.vlgmr.msrb.gmra.mxu0 %vm1136_vm2, %v4057_v13  ;;  %3390 = vmatmul.msk.f32.vlgmr.msrb.gmra.mxu1 %vm1136_vm2, %v4057_v13 }
 0x132   : > { %v1129_v59 = vmax.f32 %v1042_v57, 0.0  ;;  %v1130_v60 = vmax.f32 %v1065_v58, 0.0 }
 0x134   : > { %1753 = vmatpush.msrb.mxu2 %v1129_v59  ;;  %1773 = vmatpush.msrb.mxu3 %v1130_v60 }
 0x136   : > { %1754 = vmatpush.msrb.mxu2 %v1097_v61  ;;  %1774 = vmatpush.msrb.mxu3 %v1098_v62 }
 0x137   : > { %3391 = vmatmul.msk.f32.vlgmr.msrb.gmra.mxu2 %vm1136_vm2, %v4057_v13  ;;  %3392 = vmatmul.msk.f32.vlgmr.msrb.gmra.mxu3 %vm1136_vm2, %v4057_v13 }
 0x13d   : > { %v1156_v51 = vpop.f32.mrf.mxu0  ;;  %v1176_v54 = vpop.f32.mrf.mxu1 }
 0x13e   : > { %v1157_v2 = vadd.f32 %v1156_v51, %v4180_v1  ;;  %v1177_v3 = vadd.f32 %v1176_v54, %v4180_v1 }
 0x140   : > { %v1779_v6 = vmax.f32 %v1157_v2, 0.0  ;;  %v1780_v7 = vmax.f32 %v1177_v3, 0.0 }
 0x142   : > { %1834 = vmatpush.msra.mxu0 %v1779_v6  ;;  %1854 = vmatpush.msra.mxu1 %v1780_v7 }
 0x143   : > { %3393 = vmatmul.msk.f32.vlgmr.msra.gmra.mxu0 %vm1816_vm3, %v4189_v11  ;;  %3394 = vmatmul.msk.f32.vlgmr.msra.gmra.mxu1 %vm1816_vm3, %v4189_v11 }
 0x14a   : > { %v1196_v63 = vpop.f32.mrf.mxu2  ;;  %v1216_v0 = vpop.f32.mrf.mxu3 }
 0x14b   : > { %v1197_v4 = vadd.f32 %v1196_v63, %v4180_v1  ;;  %v1217_v5 = vadd.f32 %v1216_v0, %v4180_v1 }
 0x14d   : > { %v1781_v8 = vmax.f32 %v1197_v4, 0.0  ;;  %v1782_v9 = vmax.f32 %v1217_v5, 0.0  ;;  %v1236_v10 = vpop.f32.mrf.mxu0  ;;  %v1256_v13 = vpop.f32.mrf.mxu1 }
 0x14e   : > { %v1237_v12 = vadd.f32 %v1236_v10, %v4180_v1  ;;  %v1257_v14 = vadd.f32 %v1256_v13, %v4180_v1 }
 0x14f   : > { %1874 = vmatpush.msra.mxu2 %v1781_v8  ;;  %1894 = vmatpush.msra.mxu3 %v1782_v9 }
 0x150   : > { %v1783_v15 = vmax.f32 %v1237_v12, 0.0  ;;  %v1784_v16 = vmax.f32 %v1257_v14, 0.0  ;;  %3395 = vmatmul.msk.f32.vlgmr.msra.gmra.mxu2 %vm1816_vm3, %v4189_v11  ;;  %3396 = vmatmul.msk.f32.vlgmr.msra.gmra.mxu3 %vm1816_vm3, %v4189_v11 }
 0x152   : > { %1914 = vmatpush.msrb.mxu0 %v1783_v15  ;;  %1934 = vmatpush.msrb.mxu1 %v1784_v16 }
 0x153   : > { %3397 = vmatmul.msk.f32.vlgmr.msrb.gmra.mxu0 %vm1816_vm3, %v4189_v11  ;;  %3398 = vmatmul.msk.f32.vlgmr.msrb.gmra.mxu1 %vm1816_vm3, %v4189_v11 }
 0x15a   : > { %v1276_v17 = vpop.f32.mrf.mxu2  ;;  %v1296_v18 = vpop.f32.mrf.mxu3 }
 0x15b   : > { %v1277_v19 = vadd.f32 %v1276_v17, %v4180_v1  ;;  %v1297_v20 = vadd.f32 %v1296_v18, %v4180_v1 }
 0x15d   : > { %v1785_v21 = vmax.f32 %v1277_v19, 0.0  ;;  %v1786_v22 = vmax.f32 %v1297_v20, 0.0  ;;  %v1316_v23 = vpop.f32.mrf.mxu0  ;;  %v1336_v24 = vpop.f32.mrf.mxu1 }
 0x15e   : > { %v1317_v25 = vadd.f32 %v1316_v23, %v4180_v1  ;;  %v1337_v26 = vadd.f32 %v1336_v24, %v4180_v1 }
 0x15f   : > { %1954 = vmatpush.msrb.mxu2 %v1785_v21  ;;  %1974 = vmatpush.msrb.mxu3 %v1786_v22 }
 0x160   : > { %v1787_v27 = vmax.f32 %v1317_v25, 0.0  ;;  %v1788_v28 = vmax.f32 %v1337_v26, 0.0  ;;  %3399 = vmatmul.msk.f32.vlgmr.msrb.gmra.mxu2 %vm1816_vm3, %v4189_v11  ;;  %3400 = vmatmul.msk.f32.vlgmr.msrb.gmra.mxu3 %vm1816_vm3, %v4189_v11 }
 0x162   : > { %1994 = vmatpush.msra.mxu0 %v1787_v27  ;;  %2014 = vmatpush.msra.mxu1 %v1788_v28 }
 0x163   : > { %3401 = vmatmul.msk.f32.vlgmr.msra.gmra.mxu0 %vm1816_vm3, %v4189_v11  ;;  %3402 = vmatmul.msk.f32.vlgmr.msra.gmra.mxu1 %vm1816_vm3, %v4189_v11 }
 0x16a   : > { %v1356_v30 = vpop.f32.mrf.mxu2  ;;  %v1376_v31 = vpop.f32.mrf.mxu3 }
 0x16b   : > { %v1357_v32 = vadd.f32 %v1356_v30, %v4180_v1  ;;  %v1377_v33 = vadd.f32 %v1376_v31, %v4180_v1 }
 0x16d   : > { %v1789_v34 = vmax.f32 %v1357_v32, 0.0  ;;  %v1790_v35 = vmax.f32 %v1377_v33, 0.0  ;;  %v1396_v36 = vpop.f32.mrf.mxu0  ;;  %v1416_v37 = vpop.f32.mrf.mxu1 }
 0x16e   : > { %v1397_v38 = vadd.f32 %v1396_v36, %v4180_v1  ;;  %v1417_v39 = vadd.f32 %v1416_v37, %v4180_v1 }
 0x16f   : > { %2034 = vmatpush.msra.mxu2 %v1789_v34  ;;  %2054 = vmatpush.msra.mxu3 %v1790_v35 }
 0x170   : > { %v1791_v40 = vmax.f32 %v1397_v38, 0.0  ;;  %v1792_v41 = vmax.f32 %v1417_v39, 0.0  ;;  %3403 = vmatmul.msk.f32.vlgmr.msra.gmra.mxu2 %vm1816_vm3, %v4189_v11  ;;  %3404 = vmatmul.msk.f32.vlgmr.msra.gmra.mxu3 %vm1816_vm3, %v4189_v11 }
 0x172   : > { %2074 = vmatpush.msrb.mxu0 %v1791_v40  ;;  %2094 = vmatpush.msrb.mxu1 %v1792_v41 }
 0x173   : > { %3405 = vmatmul.msk.f32.vlgmr.msrb.gmra.mxu0 %vm1816_vm3, %v4189_v11  ;;  %3406 = vmatmul.msk.f32.vlgmr.msrb.gmra.mxu1 %vm1816_vm3, %v4189_v11 }
 0x17a   : > { %v1436_v42 = vpop.f32.mrf.mxu2  ;;  %v1456_v43 = vpop.f32.mrf.mxu3 }
 0x17b   : > { %v1437_v44 = vadd.f32 %v1436_v42, %v4180_v1  ;;  %v1457_v45 = vadd.f32 %v1456_v43, %v4180_v1 }
 0x17d   : > { %v1793_v46 = vmax.f32 %v1437_v44, 0.0  ;;  %v1794_v47 = vmax.f32 %v1457_v45, 0.0  ;;  %v1476_v48 = vpop.f32.mrf.mxu0  ;;  %v1496_v49 = vpop.f32.mrf.mxu1 }
 0x17e   : > { %v1477_v50 = vadd.f32 %v1476_v48, %v4180_v1  ;;  %v1497_v52 = vadd.f32 %v1496_v49, %v4180_v1 }
 0x17f   : > { %2114 = vmatpush.msrb.mxu2 %v1793_v46  ;;  %2134 = vmatpush.msrb.mxu3 %v1794_v47 }
 0x180   : > { %v1795_v53 = vmax.f32 %v1477_v50, 0.0  ;;  %v1796_v55 = vmax.f32 %v1497_v52, 0.0  ;;  %3407 = vmatmul.msk.f32.vlgmr.msrb.gmra.mxu2 %vm1816_vm3, %v4189_v11  ;;  %3408 = vmatmul.msk.f32.vlgmr.msrb.gmra.mxu3 %vm1816_vm3, %v4189_v11 }
 0x182   : > { %2154 = vmatpush.msra.mxu0 %v1795_v53  ;;  %2174 = vmatpush.msra.mxu1 %v1796_v55 }
 0x183   : > { %3409 = vmatmul.msk.f32.vlgmr.msra.gmra.mxu0 %vm1816_vm3, %v4189_v11  ;;  %3410 = vmatmul.msk.f32.vlgmr.msra.gmra.mxu1 %vm1816_vm3, %v4189_v11 }
 0x18a   : > { %v1516_v56 = vpop.f32.mrf.mxu2  ;;  %v1536_v57 = vpop.f32.mrf.mxu3 }
 0x18b   : > { %v1517_v58 = vadd.f32 %v1516_v56, %v4180_v1  ;;  %v1537_v59 = vadd.f32 %v1536_v57, %v4180_v1 }
 0x18d   : > { %v1797_v60 = vmax.f32 %v1517_v58, 0.0  ;;  %v1798_v61 = vmax.f32 %v1537_v59, 0.0  ;;  %v1556_v62 = vpop.f32.mrf.mxu0  ;;  %v1576_v51 = vpop.f32.mrf.mxu1 }
 0x18e   : > { %v1557_v54 = vadd.f32 %v1556_v62, %v4180_v1  ;;  %v1577_v63 = vadd.f32 %v1576_v51, %v4180_v1 }
 0x18f   : > { %2194 = vmatpush.msra.mxu2 %v1797_v60  ;;  %2214 = vmatpush.msra.mxu3 %v1798_v61 }
 0x190   : > { %v1799_v0 = vmax.f32 %v1557_v54, 0.0  ;;  %v1800_v2 = vmax.f32 %v1577_v63, 0.0  ;;  %3411 = vmatmul.msk.f32.vlgmr.msra.gmra.mxu2 %vm1816_vm3, %v4189_v11  ;;  %3412 = vmatmul.msk.f32.vlgmr.msra.gmra.mxu3 %vm1816_vm3, %v4189_v11 }
 0x192   : > { %2234 = vmatpush.msrb.mxu0 %v1799_v0  ;;  %2254 = vmatpush.msrb.mxu1 %v1800_v2 }
 0x193   : > { %3413 = vmatmul.msk.f32.vlgmr.msrb.gmra.mxu0 %vm1816_vm3, %v4189_v11  ;;  %3414 = vmatmul.msk.f32.vlgmr.msrb.gmra.mxu1 %vm1816_vm3, %v4189_v11 }
 0x194   : > { %v4292_v39 = vpop.permute.xlu1 %1813 }
 0x19a   : > { %v1596_v3 = vpop.f32.mrf.mxu2  ;;  %v1616_v4 = vpop.f32.mrf.mxu3 }
 0x19b   : > { %v1597_v5 = vadd.f32 %v1596_v3, %v4180_v1  ;;  %v1617_v6 = vadd.f32 %v1616_v4, %v4180_v1 }
 0x19d   : > { %v1801_v7 = vmax.f32 %v1597_v5, 0.0  ;;  %v1802_v8 = vmax.f32 %v1617_v6, 0.0  ;;  %v1636_v9 = vpop.f32.mrf.mxu0  ;;  %v1656_v10 = vpop.f32.mrf.mxu1 }
 0x19e   : > { %v1637_v13 = vadd.f32 %v1636_v9, %v4180_v1  ;;  %v1657_v12 = vadd.f32 %v1656_v10, %v4180_v1 }
 0x19f   : > { %2274 = vmatpush.msrb.mxu2 %v1801_v7  ;;  %2294 = vmatpush.msrb.mxu3 %v1802_v8 }
 0x1a0   : > { %v1803_v14 = vmax.f32 %v1637_v13, 0.0  ;;  %v1804_v15 = vmax.f32 %v1657_v12, 0.0  ;;  %3415 = vmatmul.msk.f32.vlgmr.msrb.gmra.mxu2 %vm1816_vm3, %v4189_v11  ;;  %3416 = vmatmul.msk.f32.vlgmr.msrb.gmra.mxu3 %vm1816_vm3, %v4189_v11 }
 0x1a2   : > { %2314 = vmatpush.msra.mxu0 %v1803_v14  ;;  %2334 = vmatpush.msra.mxu1 %v1804_v15 }
 0x1a3   : > { %3418 = vmatmul.msk.f32.vlgmr.msra.gmra.mxu1 %vm1816_vm3, %v4189_v11  ;;  %3417 = vmatmul.msk.f32.vlgmr.msra.gmra.mxu0 %vm1816_vm3, %v4189_v11 }
 0x1aa   : > { %v1676_v16 = vpop.f32.mrf.mxu2  ;;  %v1696_v17 = vpop.f32.mrf.mxu3 }
 0x1ab   : > { %v1677_v18 = vadd.f32 %v1676_v16, %v4180_v1  ;;  %v1697_v19 = vadd.f32 %v1696_v17, %v4180_v1 }
 0x1ad   : > { %v1805_v20 = vmax.f32 %v1677_v18, 0.0  ;;  %v1806_v21 = vmax.f32 %v1697_v19, 0.0  ;;  %v1716_v22 = vpop.f32.mrf.mxu0  ;;  %v1736_v23 = vpop.f32.mrf.mxu1 }
 0x1ae   : > { %v1717_v24 = vadd.f32 %v1716_v22, %v4180_v1  ;;  %v1737_v25 = vadd.f32 %v1736_v23, %v4180_v1 }
 0x1af   : > { %2354 = vmatpush.msra.mxu2 %v1805_v20  ;;  %2374 = vmatpush.msra.mxu3 %v1806_v21 }
 0x1b0   : > { %v1807_v26 = vmax.f32 %v1717_v24, 0.0  ;;  %v1808_v27 = vmax.f32 %v1737_v25, 0.0  ;;  %3419 = vmatmul.msk.f32.vlgmr.msra.gmra.mxu2 %vm1816_vm3, %v4189_v11  ;;  %3420 = vmatmul.msk.f32.vlgmr.msra.gmra.mxu3 %vm1816_vm3, %v4189_v11 }
 0x1b2   : > { %2394 = vmatpush.msrb.mxu0 %v1807_v26  ;;  %2414 = vmatpush.msrb.mxu1 %v1808_v27 }
 0x1b3   : > { %3421 = vmatmul.msk.f32.vlgmr.msrb.gmra.mxu0 %vm1816_vm3, %v4189_v11  ;;  %3422 = vmatmul.msk.f32.vlgmr.msrb.gmra.mxu1 %vm1816_vm3, %v4189_v11 }
 0x1ba   : > { %v1756_v28 = vpop.f32.mrf.mxu2  ;;  %v1776_v29 = vpop.f32.mrf.mxu3 }
 0x1bb   : > { %v1757_v30 = vadd.f32 %v1756_v28, %v4180_v1  ;;  %v1777_v31 = vadd.f32 %v1776_v29, %v4180_v1 }
 0x1bd   : > { %v1809_v32 = vmax.f32 %v1757_v30, 0.0  ;;  %v1810_v33 = vmax.f32 %v1777_v31, 0.0 }
 0x1bf   : > { %2434 = vmatpush.msrb.mxu2 %v1809_v32  ;;  %2454 = vmatpush.msrb.mxu3 %v1810_v33 }
 0x1c0   : > { %3423 = vmatmul.msk.f32.vlgmr.msrb.gmra.mxu2 %vm1816_vm3, %v4189_v11  ;;  %3424 = vmatmul.msk.f32.vlgmr.msrb.gmra.mxu3 %vm1816_vm3, %v4189_v11  ;;  %v4284_v34 = vpop.f32.mrf.mxu0  ;;  %v4286_v35 = vpop.f32.mrf.mxu1 }
 0x1d0   : > { %v1916_v38 = vpop.f32.mrf.mxu0  ;;  %v1936_v1 = vpop.f32.mrf.mxu1 }
 0x1d1   : > { %v1917_v40 = vadd.f32 %v1916_v38, %v4292_v39  ;;  %v1937_v41 = vadd.f32 %v1936_v1, %v4292_v39 }
 0x1d3   : > { %v4288_v36 = vpop.f32.mrf.mxu2  ;;  %v4290_v37 = vpop.f32.mrf.mxu3  ;;  %v3429_v42 = vmul.f32 -1.442695, %v1917_v40  ;;  %v3430_v43 = vmul.f32 -1.442695, %v1937_v41 }
 0x1d5   : > { %3515 = vpow2.f32 %v3429_v42 }
 0x1d6   : > { %3517 = vpow2.f32 %v3430_v43 }
 0x1db   : > { %v3516_v53 = vpop.eup %3515 }
 0x1dc   : > { %v3518_v56 = vpop.eup %3517  ;;  %v4300_v57 = vadd.f32 1.0, %v3516_v53 }
 0x1dd   : > { %v4302_v59 = vadd.f32 1.0, %v3518_v56 }
 0x1de   : > { %v2658_v9 = vand.u32 2147483648, %v4300_v57  ;;  %vm2652_vm4 = vweird.f32 %v4300_v57  ;;  %v2656_v12 = vand.u32 2147483647, %v4300_v57 }
 0x1df   : > { %v2673_v10 = vand.u32 2147483648, %v4302_v59  ;;  %vm2667_vm5 = vweird.f32 %v4302_v59  ;;  %v2671_v19 = vand.u32 2147483647, %v4302_v59 }
 0x1e0   : > { %v1996_v47 = vpop.f32.mrf.mxu0  ;;  %v2016_v52 = vpop.f32.mrf.mxu1  ;;  %v4341_v23 = vor.u32 1.1754944e-38, %v2658_v9  ;;  %vm4360_vm9 = vcmp.eq.f32.partialorder %v2656_v12, 8.507059e+37 }
 0x1e1   : > { %v1997_v48 = vadd.f32 %v1996_v47, %v4292_v39  ;;  %v2017_v55 = vadd.f32 %v2016_v52, %v4292_v39  ;;  %v4343_v24 = vor.u32 1.1754944e-38, %v2673_v10  ;;  %vm4383_vm12 = vcmp.eq.f32.partialorder %v2671_v19, 8.507059e+37 }
 0x1e3   : > { %v1956_v11 = vpop.f32.mrf.mxu2  ;;  %v1976_v44 = vpop.f32.mrf.mxu3  ;;  %v3433_v58 = vmul.f32 -1.442695, %v1997_v48  ;;  %v3434_v60 = vmul.f32 -1.442695, %v2017_v55 }
 0x1e4   : > { %v1957_v45 = vadd.f32 %v1956_v11, %v4292_v39  ;;  %v1977_v46 = vadd.f32 %v1976_v44, %v4292_v39 }
 0x1e6   : > { %v3431_v49 = vmul.f32 -1.442695, %v1957_v45  ;;  %v3432_v50 = vmul.f32 -1.442695, %v1977_v46 }
 0x1e8   : > { %3519 = vpow2.f32 %v3431_v49 }
 0x1e9   : > { %3521 = vpow2.f32 %v3432_v50 }
 0x1ea   : > { %3523 = vrcp.f32 %v4300_v57 }
 0x1eb   : > { %3525 = vrcp.f32 %v4302_v59 }
 0x1ec   : > { %3527 = vpow2.f32 %v3433_v58 }
 0x1ed   : > { %3529 = vpow2.f32 %v3434_v60 }
 0x1ee   : > { %v3520_v61 = vpop.eup %3519 }
 0x1ef   : > { %v3522_v62 = vpop.eup %3521  ;;  %v4306_v51 = vadd.f32 1.0, %v3520_v61 }
 0x1f0   : > { %v4308_v54 = vpop.eup %3523  ;;  %v4310_v63 = vadd.f32 1.0, %v3522_v62  ;;  %v2076_v26 = vpop.f32.mrf.mxu0 }
 0x1f1   : > { %v4312_v0 = vpop.eup %3525  ;;  %3531 = vrcp.f32 %v4306_v51  ;;  %v2648_v3 = vmul.f32 %v4308_v54, %v4300_v57  ;;  %vm2653_vm6 = vweird.f32 %v4308_v54  ;;  %vm2682_vm7 = vweird.f32 %v4306_v51  ;;  %v2096_v44 = vpop.f32.mrf.mxu1 }
 0x1f2   : > { %v3528_v2 = vpop.eup %3527  ;;  %3533 = vrcp.f32 %v4310_v63  ;;  %v2663_v5 = vmul.f32 %v4312_v0, %v4302_v59  ;;  %v2688_v27 = vand.u32 2147483648, %v4306_v51  ;;  %v2703_v28 = vand.u32 2147483648, %v4310_v63  ;;  %vm4374_vm11 = vmor %vm2652_vm4, %vm2653_vm6 }
 0x1f3   : > { %v3530_v4 = vpop.eup %3529  ;;  %v4320_v6 = vadd.f32 1.0, %v3528_v2  ;;  %v2649_v8 = vsub.f32 1.0, %v2648_v3  ;;  %v2036_v16 = vpop.f32.mrf.mxu2  ;;  %vm2668_vm8 = vweird.f32 %v4312_v0  ;;  %v2686_v31 = vand.u32 2147483647, %v4306_v51 }
 0x1f4   : > { %v4322_v7 = vadd.f32 1.0, %v3530_v4  ;;  %v2664_v14 = vsub.f32 1.0, %v2663_v5  ;;  %v2056_v17 = vpop.f32.mrf.mxu3  ;;  %v2037_v20 = vadd.f32 %v2036_v16, %v4292_v39  ;;  %v2077_v40 = vadd.f32 %v2076_v26, %v4292_v39  ;;  %vm4414_vm2 = vmor %vm2667_vm5, %vm2668_vm8 }
 0x1f5   : > { %3535 = vrcp.f32 %v4320_v6  ;;  %v2057_v21 = vadd.f32 %v2056_v17, %v4292_v39  ;;  %v2650_v22 = vmul.f32 %v4308_v54, %v2649_v8  ;;  %vm2697_vm10 = vweird.f32 %v4310_v63 }
 0x1f6   : > { %3537 = vrcp.f32 %v4322_v7  ;;  %v2665_v29 = vmul.f32 %v4312_v0, %v2664_v14  ;;  %v3435_v38 = vmul.f32 -1.442695, %v2037_v20  ;;  %v2701_v43 = vand.u32 2147483647, %v4310_v63 }
 0x1f7   : > { %v4326_v13 = vpop.eup %3531  ;;  %v3436_v1 = vmul.f32 -1.442695, %v2057_v21  ;;  %v4358_v41 = vadd.f32 %v4308_v54, %v2650_v22  ;;  %v4378_v47 = vor.u32 1.1754944e-38, %v2688_v27  ;;  %v4380_v48 = vor.u32 1.1754944e-38, %v2703_v28 }
 0x1f8   : > { %v2678_v15 = vmul.f32 %v4326_v13, %v4306_v51  ;;  %v4333_v18 = vpop.eup %3533  ;;  %3539 = vpow2.f32 %v3435_v38  ;;  %v3437_v49 = vmul.f32 -1.442695, %v2077_v40  ;;  %v2666_v50 = vadd.f32 %v4312_v0, %v2665_v29 }
 0x1f9   : > { %v2693_v25 = vmul.f32 %v4333_v18, %v4310_v63  ;;  %vm2712_vm13 = vweird.f32 %v4320_v6  ;;  %v2716_v55 = vand.u32 2147483647, %v4320_v6  ;;  %vm2683_vm14 = vweird.f32 %v4326_v13 }
 0x1fa   : > { %v2679_v30 = vsub.f32 1.0, %v2678_v15  ;;  %3541 = vpow2.f32 %v3436_v1  ;;  %v2097_v58 = vadd.f32 %v2096_v44, %v4292_v39  ;;  %v2655_v60 = vsel %vm4374_vm11, %v4308_v54, %v4358_v41  ;;  %vm4428_vm4 = vmor %vm2682_vm7, %vm2683_vm14 }
 0x1fb   : > { %v4354_v32 = vpop.eup %3535  ;;  %v2694_v33 = vsub.f32 1.0, %v2693_v25  ;;  %vm4399_vm15 = vcmp.eq.f32.partialorder %v2686_v31, 8.507059e+37  ;;  %vm4403_vm0 = vcmp.eq.f32.partialorder %v2701_v43, 8.507059e+37  ;;  %v2718_v3 = vand.u32 2147483648, %v4320_v6 }
 0x1fc   : > { %v2708_v11 = vmul.f32 %v4354_v32, %v4320_v6  ;;  %v4368_v45 = vpop.eup %3537  ;;  %v2680_v53 = vmul.f32 %v4326_v13, %v2679_v30  ;;  %vm2727_vm1 = vweird.f32 %v4322_v7  ;;  %3543 = vpow2.f32 %v3437_v49 }
 0x1fd   : > { %v2723_v56 = vmul.f32 %v4368_v45, %v4322_v7  ;;  %v2695_v57 = vmul.f32 %v4333_v18, %v2694_v33  ;;  %v3438_v8 = vmul.f32 -1.442695, %v2097_v58  ;;  %vm2698_vm3 = vweird.f32 %v4333_v18 }
 0x1fe   : > { %v2709_v2 = vsub.f32 1.0, %v2708_v11  ;;  %v2681_v14 = vadd.f32 %v4326_v13, %v2680_v53  ;;  %v3540_v17 = vpop.eup %3539  ;;  %vm2728_vm5 = vweird.f32 %v4368_v45  ;;  %v2670_v28 = vsel %vm4414_vm2, %v4312_v0, %v2666_v50  ;;  %vm4443_vm6 = vmor %vm2697_vm10, %vm2698_vm3 }
 0x1ff   : > { %v2724_v4 = vsub.f32 1.0, %v2723_v56  ;;  %v2696_v19 = vadd.f32 %v4333_v18, %v2695_v57  ;;  %3545 = vpow2.f32 %v3438_v8  ;;  %v4434_v25 = vadd.f32 1.0, %v3540_v17  ;;  %vm4464_vm8 = vmor %vm2727_vm1, %vm2728_vm5 }
 0x200   : > { %v2156_v5 = vpop.f32.mrf.mxu0  ;;  %v2710_v22 = vmul.f32 %v4354_v32, %v2709_v2  ;;  %v3542_v27 = vpop.eup %3541  ;;  %v2733_v29 = vand.u32 2147483648, %v4322_v7  ;;  %vm2713_vm7 = vweird.f32 %v4354_v32  ;;  %v2731_v33 = vand.u32 2147483647, %v4322_v7 }
 0x201   : > { %v2157_v54 = vadd.f32 %v2156_v5, %v4292_v39  ;;  %v2725_v15 = vmul.f32 %v4368_v45, %v2724_v4  ;;  %v4455_v63 = vsel %vm4360_vm9, %v4341_v23, %v2655_v60  ;;  %v2685_v38 = vsel %vm4428_vm4, %v4326_v13, %v2681_v14  ;;  %vm4485_vm9 = vmor %vm2712_vm13, %vm2713_vm7  ;;  %v2176_v44 = vpop.f32.mrf.mxu1 }
 0x202   : > { %v3544_v0 = vpop.eup %3543  ;;  %v4468_v40 = vadd.f32 1.0, %v3542_v27  ;;  %v2700_v23 = vsel %vm4443_vm6, %v4333_v18, %v2696_v19  ;;  %v2711_v41 = vadd.f32 %v4354_v32, %v2710_v22  ;;  %v4479_v7 = vsel %vm4383_vm12, %v4343_v24, %v2670_v28 }
 0x203   : > { %v2116_v9 = vpop.f32.mrf.mxu2  ;;  %v2136_v10 = vpop.f32.mrf.mxu3  ;;  %v3441_v21 = vmul.f32 -1.442695, %v2157_v54  ;;  %v2726_v31 = vadd.f32 %v4368_v45, %v2725_v15  ;;  %v4474_v42 = vadd.f32 1.0, %v3544_v0  ;;  %vm4489_vm10 = vcmp.eq.f32.partialorder %v2716_v55, 8.507059e+37 }
 0x204   : > { %v2117_v16 = vadd.f32 %v2116_v9, %v4292_v39  ;;  %v2137_v20 = vadd.f32 %v2136_v10, %v4292_v39  ;;  %v2734_v11 = vor.u32 1.1754944e-38, %v2733_v29  ;;  %v3102_v46 = vrot.slane %v4455_v63, 4 }
 0x205   : > { %3547 = vpow2.f32 %v3441_v21  ;;  %v3546_v13 = vpop.eup %3545  ;;  %v2730_v24 = vsel %vm4464_vm8, %v4368_v45, %v2726_v31  ;;  %vm2732_vm11 = vcmp.eq.f32.partialorder %v2731_v33, 8.507059e+37  ;;  %v4502_v49 = vsel %vm4399_vm15, %v4378_v47, %v2685_v38 }
 0x206   : > { %v3439_v26 = vmul.f32 -1.442695, %v2117_v16  ;;  %v3440_v30 = vmul.f32 -1.442695, %v2137_v20  ;;  %3549 = vrcp.f32 %v4434_v25  ;;  %v4507_v50 = vsel %vm4403_vm0, %v4380_v48, %v2700_v23 }
 0x207   : > { %v2719_v52 = vor.u32 1.1754944e-38, %v2718_v3  ;;  %v4509_v53 = vadd.f32 1.0, %v3546_v13  ;;  %v3103_v45 = vrot.slane %v4479_v7, 3  ;;  %v2715_v56 = vsel %vm4485_vm9, %v4354_v32, %v2711_v41 }
 0x208   : > { %3551 = vpow2.f32 %v3439_v26  ;;  %v2177_v47 = vadd.f32 %v2176_v44, %v4292_v39  ;;  %v4520_v60 = vsel %vm2732_vm11, %v2734_v11, %v2730_v24  ;;  %v2746_v61 = vand.u32 2147483647, %v4434_v25 }
 0x209   : > { %3553 = vpow2.f32 %v3440_v30  ;;  %v2748_v32 = vand.u32 2147483648, %v4434_v25  ;;  %v4535_v8 = vsel %vm4489_vm10, %v2719_v52, %v2715_v56  ;;  %v3106_v12 = vrot.slane %v4520_v60, 7 }
 0x20a   : > { %3555 = vrcp.f32 %v4468_v40  ;;  %vm2742_vm12 = vweird.f32 %v4434_v25  ;;  %v3442_v15 = vmul.f32 -1.442695, %v2177_v47  ;;  %vm4547_vm13 = vcmp.eq.f32.partialorder %v2746_v61, 8.507059e+37 }
 0x20b   : > { %3557 = vrcp.f32 %v4474_v42  ;;  %v3548_v6 = vpop.eup %3547  ;;  %v2761_v19 = vand.u32 2147483647, %v4468_v40  ;;  %v2749_v21 = vor.u32 1.1754944e-38, %v2748_v32  ;;  %vm2757_vm14 = vweird.f32 %v4468_v40 }
 0x20c   : > { %v4511_v55 = vpop.eup %3549  ;;  %v4517_v57 = vadd.f32 1.0, %v3548_v6  ;;  %3559 = vrcp.f32 %v4509_v53  ;;  %v2763_v22 = vand.u32 2147483648, %v4468_v40  ;;  %v2776_v28 = vand.u32 2147483647, %v4474_v42 }
 0x20d   : > { %v2738_v48 = vmul.f32 %v4511_v55, %v4434_v25  ;;  %vm2743_vm15 = vweird.f32 %v4511_v55  ;;  %v2778_v29 = vand.u32 2147483648, %v4474_v42  ;;  %vm4570_vm1 = vcmp.eq.f32.partialorder %v2761_v19, 8.507059e+37 }
 0x20e   : > { %v3552_v58 = vpop.eup %3551  ;;  %3561 = vrcp.f32 %v4517_v57  ;;  %vm2772_vm2 = vweird.f32 %v4474_v42  ;;  %vm4577_vm3 = vmor %vm2742_vm12, %vm2743_vm15  ;;  %v2791_v13 = vand.u32 2147483647, %v4509_v53  ;;  %v2764_v25 = vor.u32 1.1754944e-38, %v2763_v22 }
 0x20f   : > { %v3554_v62 = vpop.eup %3553  ;;  %v4529_v4 = vadd.f32 1.0, %v3552_v58  ;;  %v2739_v9 = vsub.f32 1.0, %v2738_v48  ;;  %vm4592_vm5 = vcmp.eq.f32.partialorder %v2776_v28, 8.507059e+37  ;;  %v2793_v44 = vand.u32 2147483648, %v4509_v53 }
 0x210   : > { %v4531_v5 = vpop.eup %3555  ;;  %v4537_v10 = vadd.f32 1.0, %v3554_v62  ;;  %v2779_v52 = vor.u32 1.1754944e-38, %v2778_v29  ;;  %v4603_v47 = vadd.f32 %v4284_v34, %v4292_v39  ;;  %vm2787_vm7 = vweird.f32 %v4509_v53  ;;  %v2256_v32 = vpop.f32.mrf.mxu1 }
 0x211   : > { %v4540_v54 = vpop.eup %3557  ;;  %v2753_v14 = vmul.f32 %v4531_v5, %v4468_v40  ;;  %v2740_v16 = vmul.f32 %v4511_v55, %v2739_v9  ;;  %3563 = vrcp.f32 %v4529_v4  ;;  %vm2758_vm0 = vweird.f32 %v4531_v5 }
 0x212   : > { %v2768_v20 = vmul.f32 %v4540_v54, %v4474_v42  ;;  %v4557_v26 = vpop.eup %3559  ;;  %3565 = vrcp.f32 %v4537_v10  ;;  %vm4588_vm4 = vmor %vm2757_vm14, %vm2758_vm0  ;;  %vm2773_vm6 = vweird.f32 %v4540_v54  ;;  %v2808_v62 = vand.u32 2147483648, %v4529_v4 }
 0x213   : > { %v2754_v59 = vsub.f32 1.0, %v2753_v14  ;;  %v2783_v30 = vmul.f32 %v4557_v26, %v4509_v53  ;;  %v2741_v33 = vadd.f32 %v4511_v55, %v2740_v16  ;;  %3567 = vpow2.f32 %v3442_v15  ;;  %v2196_v6 = vpop.f32.mrf.mxu2  ;;  %v2216_v56 = vpop.f32.mrf.mxu3  ;;  %vm4627_vm10 = vmor %vm2772_vm2, %vm2773_vm6 }
 0x214   : > { %v2769_v27 = vsub.f32 1.0, %v2768_v20  ;;  %v4567_v31 = vpop.eup %3561  ;;  %vm2788_vm8 = vweird.f32 %v4557_v26  ;;  %vm4619_vm9 = vcmp.eq.f32.partialorder %v2791_v13, 8.507059e+37  ;;  %v2794_v16 = vor.u32 1.1754944e-38, %v2793_v44 }
 0x215   : > { %v2755_v51 = vmul.f32 %v4531_v5, %v2754_v59  ;;  %v2784_v41 = vsub.f32 1.0, %v2783_v30  ;;  %v2828_v24 = vmul.f32 %v4567_v31, %v4517_v57  ;;  %v2745_v48 = vsel %vm4577_vm3, %v4511_v55, %v2741_v33  ;;  %vm4650_vm14 = vmor %vm2787_vm7, %vm2788_vm8 }
 0x216   : > { %v2770_v23 = vmul.f32 %v4540_v54, %v2769_v27  ;;  %vm2802_vm11 = vweird.f32 %v4529_v4  ;;  %vm2832_vm12 = vweird.f32 %v4517_v57  ;;  %v4637_v20 = vsel %vm4547_vm13, %v2749_v21, %v2745_v48  ;;  %v2236_v27 = vpop.f32.mrf.mxu0 }
 0x217   : > { %v2756_v1 = vadd.f32 %v4531_v5, %v2755_v51  ;;  %v4584_v43 = vpop.eup %3563  ;;  %v2785_v40 = vmul.f32 %v4557_v26, %v2784_v41  ;;  %v2829_v19 = vsub.f32 1.0, %v2828_v24  ;;  %v2806_v42 = vand.u32 2147483647, %v4529_v4 }
 0x218   : > { %v4605_v58 = vpop.eup %3565  ;;  %v2798_v61 = vmul.f32 %v4584_v43, %v4529_v4  ;;  %v2771_v34 = vadd.f32 %v4540_v54, %v2770_v23  ;;  %v2823_v22 = vand.u32 2147483648, %v4537_v10  ;;  %v4654_v21 = vor.u32 1.1754944e-38, %v2808_v62 }
 0x219   : > { %v2760_v9 = vsel %vm4588_vm4, %v4531_v5, %v2756_v1  ;;  %v3568_v55 = vpop.eup %3567  ;;  %v2813_v5 = vmul.f32 %v4605_v58, %v4537_v10  ;;  %v2786_v59 = vadd.f32 %v4557_v26, %v2785_v40  ;;  %vm2817_vm13 = vweird.f32 %v4537_v10 }
 0x21a   : > { %v4644_v28 = vsel %vm4570_vm1, %v2764_v25, %v2760_v9  ;;  %v2799_v17 = vsub.f32 1.0, %v2798_v61  ;;  %v2775_v29 = vsel %vm4627_vm10, %v4540_v54, %v2771_v34  ;;  %v2821_v33 = vand.u32 2147483647, %v4537_v10 }
 0x21b   : > { %v2814_v30 = vsub.f32 1.0, %v2813_v5  ;;  %v4661_v0 = vadd.f32 1.0, %v3568_v55  ;;  %v3107_v53 = vrot.slane %v4637_v20, 6  ;;  %vm2803_vm15 = vweird.f32 %v4584_v43 }
 0x21c   : > { %v2830_v38 = vmul.f32 %v4567_v31, %v2829_v19  ;;  %v2197_v1 = vadd.f32 %v2196_v6, %v4292_v39  ;;  %v3108_v23 = vrot.slane %v4644_v28, 5  ;;  %v2790_v41 = vsel %vm4650_vm14, %v4557_v26, %v2786_v59  ;;  %vm4708_vm4 = vmor %vm2802_vm11, %vm2803_vm15 }
 0x21d   : > { %v4671_v54 = vor.u32 1.1754944e-38, %v2823_v22  ;;  %3569 = vrcp.f32 %v4661_v0  ;;  %v4676_v13 = vsel %vm4592_vm5, %v2779_v52, %v2775_v29  ;;  %v2800_v18 = vmul.f32 %v4584_v43, %v2799_v17 }
 0x21e   : > { %vm4679_vm0 = vcmp.eq.f32.partialorder %v2806_v42, 8.507059e+37  ;;  %vm2818_vm1 = vweird.f32 %v4605_v58  ;;  %vm2833_vm2 = vweird.f32 %v4567_v31  ;;  %v2815_v26 = vmul.f32 %v4605_v58, %v2814_v30 }
 0x21f   : > { %vm4686_vm3 = vcmp.eq.f32.partialorder %v2821_v33, 8.507059e+37  ;;  %v2836_v11 = vand.u32 2147483647, %v4517_v57  ;;  %v3443_v6 = vmul.f32 -1.442695, %v2197_v1  ;;  %v2217_v52 = vadd.f32 %v2216_v56, %v4292_v39  ;;  %vm4721_vm5 = vmor %vm2832_vm12, %vm2833_vm2 }
 0x220   : > { %v4694_v48 = vsel %vm4619_vm9, %v2794_v16, %v2790_v41  ;;  %v4697_v61 = vadd.f32 %v4567_v31, %v2830_v38  ;;  %v2237_v62 = vadd.f32 %v2236_v27, %v4292_v39  ;;  %v2257_v9 = vadd.f32 %v2256_v32, %v4292_v39  ;;  %v2336_v34 = vpop.f32.mrf.mxu1  ;;  %v2316_v56 = vpop.f32.mrf.mxu0  ;;  %vm4730_vm6 = vmor %vm2817_vm13, %vm2818_vm1 }
 0x221   : > { %v2838_v55 = vand.u32 2147483648, %v4517_v57  ;;  %3571 = vpow2.f32 %v3443_v6  ;;  %v3444_v15 = vmul.f32 -1.442695, %v2217_v52  ;;  %v2801_v19 = vadd.f32 %v4584_v43, %v2800_v18 }
 0x222   : > { %v3445_v16 = vmul.f32 -1.442695, %v2237_v62  ;;  %v3446_v32 = vmul.f32 -1.442695, %v2257_v9  ;;  %v3109_v22 = vrot.slane %v4676_v13, 4  ;;  %v2816_v27 = vadd.f32 %v4605_v58, %v2815_v26 }
 0x223   : > { %v2276_v44 = vpop.f32.mrf.mxu2  ;;  %v2296_v40 = vpop.f32.mrf.mxu3  ;;  %3573 = vpow2.f32 %v3444_v15  ;;  %v2337_v51 = vadd.f32 %v2336_v34, %v4292_v39  ;;  %v2317_v30 = vadd.f32 %v2316_v56, %v4292_v39  ;;  %v3110_v33 = vrot.slane %v4694_v48, 3 }
 0x224   : > { %v2277_v5 = vadd.f32 %v2276_v44, %v4292_v39  ;;  %v2297_v59 = vadd.f32 %v2296_v40, %v4292_v39  ;;  %v4713_v42 = vpop.eup %3569  ;;  %3575 = vpow2.f32 %v3445_v16  ;;  %vm4738_vm7 = vcmp.eq.f32.partialorder %v2836_v11, 8.507059e+37 }
 0x225   : > { %v2843_v29 = vmul.f32 %v4713_v42, %v4661_v0  ;;  %3577 = vpow2.f32 %v3446_v32  ;;  %v2805_v10 = vsel %vm4708_vm4, %v4584_v43, %v2801_v19  ;;  %v2835_v41 = vsel %vm4721_vm5, %v4567_v31, %v4697_v61 }
 0x226   : > { %v3447_v57 = vmul.f32 -1.442695, %v2277_v5  ;;  %v3448_v1 = vmul.f32 -1.442695, %v2297_v59  ;;  %v2839_v18 = vor.u32 1.1754944e-38, %v2838_v55  ;;  %v2820_v11 = vsel %vm4730_vm6, %v4605_v58, %v2816_v27 }
 0x227   : > { %v2844_v44 = vsub.f32 1.0, %v2843_v29  ;;  %v3572_v26 = vpop.eup %3571  ;;  %vm2847_vm8 = vweird.f32 %v4661_v0  ;;  %vm2848_vm9 = vweird.f32 %v4713_v42  ;;  %v3450_v6 = vmul.f32 -1.442695, %v2337_v51 }
 0x228   : > { %v4755_v43 = vadd.f32 1.0, %v3572_v26  ;;  %3579 = vpow2.f32 %v3447_v57  ;;  %v3449_v40 = vmul.f32 -1.442695, %v2317_v30  ;;  %v4760_v31 = vsel %vm4679_vm0, %v4654_v21, %v2805_v10  ;;  %vm4777_vm10 = vmor %vm2847_vm8, %vm2848_vm9 }
 0x229   : > { %v2845_v52 = vmul.f32 %v4713_v42, %v2844_v44  ;;  %v3574_v62 = vpop.eup %3573  ;;  %v2851_v61 = vand.u32 2147483647, %v4661_v0  ;;  %v2853_v58 = vand.u32 2147483648, %v4661_v0  ;;  %3581 = vpow2.f32 %v3448_v1 }
 0x22a   : > { %v3576_v9 = vpop.eup %3575  ;;  %v4767_v34 = vsel %vm4686_vm3, %v4671_v54, %v2820_v11  ;;  %3583 = vrcp.f32 %v4755_v43  ;;  %v1857_v25 = vadd.f32 %v4286_v35, %v4292_v39  ;;  %v4781_v5 = vadd.f32 1.0, %v3574_v62 }
 0x22b   : > { %v2846_v55 = vadd.f32 %v4713_v42, %v2845_v52  ;;  %v3578_v21 = vpop.eup %3577  ;;  %v4783_v54 = vadd.f32 1.0, %v3576_v9  ;;  %3585 = vpow2.f32 %v3450_v6  ;;  %v1877_v24 = vadd.f32 %v4288_v36, %v4292_v39 }
 0x22c   : > { %v4787_v56 = vadd.f32 1.0, %v3578_v21  ;;  %3587 = vpow2.f32 %v3449_v40  ;;  %v1897_v35 = vadd.f32 %v4290_v37, %v4292_v39  ;;  %v3425_v0 = vmul.f32 -1.442695, %v4603_v47 }
 0x22d   : > { %v4794_v19 = vsel %vm4738_vm7, %v2839_v18, %v2835_v41  ;;  %v2854_v14 = vor.u32 1.1754944e-38, %v2853_v58  ;;  %v2866_v16 = vand.u32 2147483647, %v4755_v43  ;;  %3589 = vrcp.f32 %v4781_v5 }
 0x22e   : > { %v3580_v32 = vpop.eup %3579  ;;  %v2850_v36 = vsel %vm4777_vm10, %v4713_v42, %v2846_v55  ;;  %vm2852_vm11 = vcmp.eq.f32.partialorder %v2851_v61, 8.507059e+37  ;;  %v2868_v59 = vand.u32 2147483648, %v4755_v43  ;;  %3591 = vrcp.f32 %v4783_v54 }
 0x22f   : > { %v3582_v47 = vpop.eup %3581  ;;  %v3111_v27 = vrot.slane %v4760_v31, 2  ;;  %v3112_v4 = vrot.slane %v4767_v34, 1  ;;  %3593 = vrcp.f32 %v4787_v56  ;;  %v4806_v51 = vmul.f32 -1.442695, %v1857_v25 }
 0x230   : > { %v2396_v37 = vpop.f32.mrf.mxu0  ;;  %v4808_v17 = vpop.eup %3583  ;;  %vm2862_vm12 = vweird.f32 %v4755_v43  ;;  %3595 = vpow2.f32 %v3425_v0  ;;  %v4811_v42 = vmul.f32 -1.442695, %v1877_v24  ;;  %v4813_v29 = vmul.f32 -1.442695, %v1897_v35 }
 0x231   : > { %v3586_v57 = vpop.eup %3585  ;;  %v4815_v30 = vsel %vm2852_vm11, %v2854_v14, %v2850_v36  ;;  %v2858_v38 = vmul.f32 %v4808_v17, %v4755_v43  ;;  %vm4819_vm14 = vcmp.eq.f32.partialorder %v2866_v16, 8.507059e+37  ;;  %v4824_v10 = vadd.f32 %v2396_v37, %v4292_v39 }
 0x232   : > { %v4826_v41 = vpop.eup %3587  ;;  %v2869_v18 = vor.u32 1.1754944e-38, %v2868_v59  ;;  %v2881_v44 = vand.u32 2147483647, %v4781_v5  ;;  %v2883_v26 = vand.u32 2147483648, %v4781_v5  ;;  %v4830_v11 = vadd.f32 1.0, %v3580_v32 }
 0x233   : > { %v4832_v6 = vpop.eup %3589  ;;  %v2859_v52 = vsub.f32 1.0, %v2858_v38  ;;  %vm2863_vm13 = vweird.f32 %v4808_v17  ;;  %vm2877_vm15 = vweird.f32 %v4781_v5  ;;  %v4836_v40 = vadd.f32 1.0, %v3582_v47  ;;  %v2356_v43 = vpop.f32.mrf.mxu2 }
 0x234   : > { %v4838_v62 = vpop.eup %3591  ;;  %v2873_v58 = vmul.f32 %v4832_v6, %v4781_v5  ;;  %vm2892_vm0 = vweird.f32 %v4783_v54  ;;  %3597 = vrcp.f32 %v4830_v11  ;;  %v2896_v21 = vand.u32 2147483647, %v4783_v54  ;;  %vm4856_vm1 = vmor %vm2862_vm12, %vm2863_vm13 }
 0x235   : > { %v4845_v9 = vpop.eup %3593  ;;  %v2860_v55 = vmul.f32 %v4808_v17, %v2859_v52  ;;  %v2888_v25 = vmul.f32 %v4838_v62, %v4783_v54  ;;  %v2898_v15 = vand.u32 2147483648, %v4783_v54  ;;  %vm4860_vm2 = vcmp.eq.f32.partialorder %v2881_v44, 8.507059e+37  ;;  %v2376_v44 = vpop.f32.mrf.mxu3 }
 0x236   : > { %v4852_v24 = vpop.eup %3595  ;;  %v2874_v0 = vsub.f32 1.0, %v2873_v58  ;;  %v2884_v16 = vor.u32 1.1754944e-38, %v2883_v26  ;;  %v2903_v32 = vmul.f32 %v4845_v9, %v4787_v56  ;;  %v2913_v37 = vand.u32 2147483648, %v4787_v56 }
 0x237   : > { %v2861_v36 = vadd.f32 %v4808_v17, %v2860_v55  ;;  %v2889_v59 = vsub.f32 1.0, %v2888_v25  ;;  %3599 = vrcp.f32 %v4836_v40  ;;  %vm2878_vm3 = vweird.f32 %v4832_v6 }
 0x238   : > { %v2875_v47 = vmul.f32 %v4832_v6, %v2874_v0  ;;  %v2904_v38 = vsub.f32 1.0, %v2903_v32  ;;  %vm2907_vm4 = vweird.f32 %v4787_v56  ;;  %v2899_v52 = vor.u32 1.1754944e-38, %v2898_v15  ;;  %vm4890_vm6 = vmor %vm2877_vm15, %vm2878_vm3 }
 0x239   : > { %v2865_v26 = vsel %vm4856_vm1, %v4808_v17, %v2861_v36  ;;  %v2911_v58 = vand.u32 2147483647, %v4787_v56  ;;  %v4876_v55 = vadd.f32 1.0, %v3586_v57  ;;  %v2890_v0 = vmul.f32 %v4838_v62, %v2889_v59 }
 0x23a   : > { %v4878_v25 = vpop.eup %3597  ;;  %v2876_v61 = vadd.f32 %v4832_v6, %v2875_v47  ;;  %vm4882_vm5 = vcmp.eq.f32.partialorder %v2896_v21, 8.507059e+37  ;;  %v2926_v2 = vand.u32 2147483647, %v4830_v11  ;;  %v2357_v35 = vadd.f32 %v2356_v43, %v4292_v39 }
 0x23b   : > { %v4894_v57 = vor.u32 1.1754944e-38, %v2913_v37  ;;  %v2918_v15 = vmul.f32 %v4878_v25, %v4830_v11  ;;  %v2928_v21 = vand.u32 2147483648, %v4830_v11  ;;  %v2377_v36 = vadd.f32 %v2376_v44, %v4292_v39 }
 0x23c   : > { %v4902_v59 = vsel %vm4819_vm14, %v2869_v18, %v2865_v26  ;;  %vm2893_vm7 = vweird.f32 %v4838_v62  ;;  %v2905_v5 = vmul.f32 %v4845_v9, %v2904_v38  ;;  %v2941_v43 = vand.u32 2147483647, %v4836_v40  ;;  %v2416_v26 = vpop.f32.mrf.mxu1 }
 0x23d   : > { %v4907_v47 = vpop.eup %3599  ;;  %vm2908_vm8 = vweird.f32 %v4845_v9  ;;  %vm4910_vm9 = vcmp.eq.f32.partialorder %v2911_v58, 8.507059e+37  ;;  %v2919_v3 = vsub.f32 1.0, %v2918_v15  ;;  %vm2922_vm10 = vweird.f32 %v4830_v11  ;;  %vm4932_vm14 = vmor %vm2892_vm0, %vm2893_vm7 }
 0x23e   : > { %3601 = vrcp.f32 %v4876_v55  ;;  %v2880_v1 = vsel %vm4890_vm6, %v4832_v6, %v2876_v61  ;;  %v2891_v18 = vadd.f32 %v4838_v62, %v2890_v0  ;;  %vm4920_vm11 = vcmp.eq.f32.partialorder %v2926_v2, 8.507059e+37  ;;  %vm4956_vm1 = vmor %vm2907_vm4, %vm2908_vm8 }
 0x23f   : > { %v2933_v44 = vmul.f32 %v4907_v47, %v4836_v40  ;;  %vm2937_vm12 = vweird.f32 %v4836_v40  ;;  %v2920_v2 = vmul.f32 %v4878_v25, %v2919_v3  ;;  %v2929_v6 = vor.u32 1.1754944e-38, %v2928_v21 }
 0x240   : > { %v2943_v61 = vand.u32 2147483648, %v4836_v40  ;;  %v2906_v0 = vadd.f32 %v4845_v9, %v2905_v5  ;;  %vm2923_vm13 = vweird.f32 %v4878_v25  ;;  %vm4940_vm15 = vcmp.eq.f32.partialorder %v2941_v43, 8.507059e+37 }
 0x241   : > { %v2934_v17 = vsub.f32 1.0, %v2933_v44  ;;  %v4946_v54 = vsel %vm4860_vm2, %v2884_v16, %v2880_v1  ;;  %vm2938_vm0 = vweird.f32 %v4907_v47  ;;  %v3451_v3 = vmul.f32 -1.442695, %v2357_v35  ;;  %vm4967_vm2 = vmor %vm2922_vm10, %vm2923_vm13 }
 0x242   : > { %v3452_v21 = vmul.f32 -1.442695, %v2377_v36  ;;  %v2895_v5 = vsel %vm4932_vm14, %v4838_v62, %v2891_v18  ;;  %v2921_v14 = vadd.f32 %v4878_v25, %v2920_v2  ;;  %v4963_v1 = vadd.f32 1.0, %v4826_v41  ;;  %vm4979_vm3 = vmor %vm2937_vm12, %vm2938_vm0 }
 0x243   : > { %v2935_v16 = vmul.f32 %v4907_v47, %v2934_v17  ;;  %v2944_v36 = vor.u32 1.1754944e-38, %v2943_v61  ;;  %3603 = vpow2.f32 %v3451_v3  ;;  %v3453_v56 = vmul.f32 -1.442695, %v4824_v10 }
 0x244   : > { %v3602_v35 = vpop.eup %3601  ;;  %v2417_v18 = vadd.f32 %v2416_v26, %v4292_v39  ;;  %v2973_v2 = vand.u32 2147483648, %v4876_v55  ;;  %v4987_v10 = vsel %vm4882_vm5, %v2899_v52, %v2895_v5  ;;  %v2910_v26 = vsel %vm4956_vm1, %v4845_v9, %v2906_v0  ;;  %v2436_v9 = vpop.f32.mrf.mxu2 }
 0x245   : > { %v2936_v58 = vadd.f32 %v4907_v47, %v2935_v16  ;;  %v2963_v11 = vmul.f32 %v3602_v35, %v4876_v55  ;;  %vm2967_vm4 = vweird.f32 %v4876_v55  ;;  %3605 = vpow2.f32 %v3452_v21  ;;  %v2456_v5 = vpop.f32.mrf.mxu3 }
 0x246   : > { %v2925_v40 = vsel %vm4967_vm2, %v4878_v25, %v2921_v14  ;;  %vm2968_vm6 = vweird.f32 %v3602_v35  ;;  %3607 = vrcp.f32 %v4963_v1  ;;  %v2971_v32 = vand.u32 2147483647, %v4876_v55 }
 0x247   : > { %v2964_v61 = vsub.f32 1.0, %v2963_v11  ;;  %v2940_v52 = vsel %vm4979_vm3, %v4907_v47, %v2936_v58  ;;  %3609 = vpow2.f32 %v3453_v56  ;;  %v3454_v17 = vmul.f32 -1.442695, %v2417_v18  ;;  %vm5013_vm5 = vmor %vm2967_vm4, %vm2968_vm6 }
 0x248   : > { %v5005_v3 = vsel %vm4910_vm9, %v4894_v57, %v2910_v26  ;;  %v2974_v21 = vor.u32 1.1754944e-38, %v2973_v2  ;;  %v5009_v14 = vsel %vm4920_vm11, %v2929_v6, %v2925_v40  ;;  %v2956_v16 = vand.u32 2147483647, %v4963_v1 }
 0x249   : > { %v2965_v25 = vmul.f32 %v3602_v35, %v2964_v61  ;;  %v3604_v43 = vpop.eup %3603  ;;  %v2958_v37 = vand.u32 2147483648, %v4963_v1  ;;  %3611 = vpow2.f32 %v3454_v17  ;;  %v5021_v57 = vsel %vm4940_vm15, %v2944_v36, %v2940_v52 }
 0x24a   : > { %v5023_v56 = vadd.f32 1.0, %v3604_v43  ;;  %v2437_v38 = vadd.f32 %v2436_v9, %v4292_v39  ;;  %vm2972_vm7 = vcmp.eq.f32.partialorder %v2971_v32, 8.507059e+37  ;;  %v2457_v18 = vadd.f32 %v2456_v5, %v4292_v39 }
 0x24b   : > { %v2966_v62 = vadd.f32 %v3602_v35, %v2965_v25  ;;  %v3606_v6 = vpop.eup %3605  ;;  %3613 = vpow2.f32 %v4806_v51  ;;  %vm2952_vm8 = vweird.f32 %v4963_v1  ;;  %vm5041_vm9 = vcmp.eq.f32.partialorder %v2956_v16, 8.507059e+37 }
 0x24c   : > { %v5029_v58 = vpop.eup %3607  ;;  %3615 = vrcp.f32 %v5023_v56  ;;  %v5037_v2 = vadd.f32 1.0, %v3606_v6  ;;  %v2959_v26 = vor.u32 1.1754944e-38, %v2958_v37  ;;  %v3455_v61 = vmul.f32 -1.442695, %v2437_v38 }
 0x24d   : > { %v2970_v15 = vsel %vm5013_vm5, %v3602_v35, %v2966_v62  ;;  %v3610_v36 = vpop.eup %3609  ;;  %v2948_v39 = vmul.f32 %v5029_v58, %v4963_v1  ;;  %3617 = vpow2.f32 %v4811_v42  ;;  %v2988_v32 = vand.u32 2147483648, %v5023_v56 }
 0x24e   : > { %v5045_v40 = vsel %vm2972_vm7, %v2974_v21, %v2970_v15  ;;  %v5047_v35 = vadd.f32 1.0, %v3610_v36  ;;  %3619 = vrcp.f32 %v5037_v2  ;;  %v3456_v17 = vmul.f32 -1.442695, %v2457_v18 }
 0x24f   : > { %v3612_v52 = vpop.eup %3611  ;;  %v5053_v9 = vadd.f32 1.0, %v4852_v24  ;;  %v3003_v25 = vand.u32 2147483648, %v5037_v2  ;;  %v2949_v5 = vsub.f32 1.0, %v2948_v39  ;;  %vm2953_vm10 = vweird.f32 %v5029_v58 }
 0x250   : > { %3621 = vrcp.f32 %v5047_v35  ;;  %v3120_v43 = vrot.slane %v5045_v40, 7  ;;  %vm2982_vm11 = vweird.f32 %v5023_v56  ;;  %v2986_v42 = vand.u32 2147483647, %v5023_v56  ;;  %vm5075_vm14 = vmor %vm2952_vm8, %vm2953_vm10 }
 0x251   : > { %v3614_v21 = vpop.eup %3613  ;;  %v5061_v47 = vadd.f32 1.0, %v3612_v52  ;;  %v3001_v24 = vand.u32 2147483647, %v5037_v2  ;;  %v2950_v37 = vmul.f32 %v5029_v58, %v2949_v5  ;;  %v3016_v62 = vand.u32 2147483647, %v5047_v35 }
 0x252   : > { %v5063_v16 = vpop.eup %3615  ;;  %3623 = vpow2.f32 %v3455_v61  ;;  %v2989_v6 = vor.u32 1.1754944e-38, %v2988_v32  ;;  %vm2997_vm12 = vweird.f32 %v5037_v2  ;;  %vm3127_vm13 = vcmask 1040384  }
 0x253   : > { %v2978_v38 = vmul.f32 %v5063_v16, %v5023_v56  ;;  %v3018_v15 = vand.u32 2147483648, %v5047_v35  ;;  %v3618_v36 = vpop.eup %3617  ;;  %v3004_v39 = vor.u32 1.1754944e-38, %v3003_v25  ;;  %v2951_v40 = vadd.f32 %v5029_v58, %v2950_v37 }
 0x254   : > { %vm3012_vm15 = vweird.f32 %v5047_v35  ;;  %3625 = vrcp.f32 %v5061_v47  ;;  %v3620_v61 = vpop.eup %3619  ;;  %vm2983_vm0 = vweird.f32 %v5063_v16  ;;  %vm5084_vm1 = vcmp.eq.f32.partialorder %v2986_v42, 8.507059e+37 }
 0x255   : > { %v2979_v52 = vsub.f32 1.0, %v2978_v38  ;;  %3627 = vpow2.f32 %v3456_v17  ;;  %v5088_v32 = vadd.f32 1.0, %v3614_v21  ;;  %v2993_v25 = vmul.f32 %v3620_v61, %v5037_v2  ;;  %vm5117_vm5 = vmor %vm2982_vm11, %vm2983_vm0 }
 0x256   : > { %v3622_v5 = vpop.eup %3621  ;;  %vm5091_vm2 = vcmp.eq.f32.partialorder %v3001_v24, 8.507059e+37  ;;  %v2955_v38 = vsel %vm5075_vm14, %v5029_v58, %v2951_v40  ;;  %vm5098_vm3 = vcmp.eq.f32.partialorder %v3016_v62, 8.507059e+37  ;;  %v3031_v42 = vand.u32 2147483647, %v5061_v47 }
 0x257   : > { %v2980_v17 = vmul.f32 %v5063_v16, %v2979_v52  ;;  %v3008_v21 = vmul.f32 %v3622_v5, %v5047_v35  ;;  %v3019_v11 = vor.u32 1.1754944e-38, %v3018_v15  ;;  %vm3027_vm4 = vweird.f32 %v5061_v47 }
 0x258   : > { %v3624_v24 = vpop.eup %3623  ;;  %v2994_v0 = vsub.f32 1.0, %v2993_v25  ;;  %v2960_v55 = vsel %vm5041_vm9, %v2959_v26, %v2955_v38  ;;  %vm3013_vm6 = vweird.f32 %v3622_v5  ;;  %v3033_v58 = vand.u32 2147483648, %v5061_v47 }
 0x259   : > { %v2981_v62 = vadd.f32 %v5063_v16, %v2980_v17  ;;  %v3009_v18 = vsub.f32 1.0, %v3008_v21  ;;  %v5110_v40 = vadd.f32 1.0, %v3624_v24  ;;  %3629 = vrcp.f32 %v5053_v9  ;;  %vm5138_vm9 = vmor %vm3012_vm15, %vm3013_vm6 }
 0x25a   : > { %v3626_v52 = vpop.eup %3625  ;;  %v2995_v51 = vmul.f32 %v3620_v61, %v2994_v0  ;;  %vm2998_vm7 = vweird.f32 %v3620_v61  ;;  %vm5121_vm8 = vcmp.eq.f32.partialorder %v3031_v42, 8.507059e+37  ;;  %v5125_v25 = vadd.f32 1.0, %v3618_v36 }
 0x25b   : > { %v3628_v38 = vpop.eup %3627  ;;  %v2985_v17 = vsel %vm5117_vm5, %v5063_v16, %v2981_v62  ;;  %v3010_v21 = vmul.f32 %v3622_v5, %v3009_v18  ;;  %v3023_v56 = vmul.f32 %v3626_v52, %v5061_v47  ;;  %3631 = vpow2.f32 %v4813_v29  ;;  %vm2999_vm10 = vmor %vm2997_vm12, %vm2998_vm7 }
 0x25c   : > { %v2996_v24 = vadd.f32 %v3620_v61, %v2995_v51  ;;  %v5133_v0 = vsel %vm3127_vm13, %v2960_v55, %v3120_v43  ;;  %v3034_v42 = vor.u32 1.1754944e-38, %v3033_v58  ;;  %3633 = vrcp.f32 %v5110_v40 }
 0x25d   : > { %v3011_v16 = vadd.f32 %v3622_v5, %v3010_v21  ;;  %v3024_v62 = vsub.f32 1.0, %v3023_v56  ;;  %vm3028_vm11 = vweird.f32 %v3626_v52  ;;  %v2596_v29 = vand.u32 2147483647, %v5053_v9 }
 0x25e   : > { %v5148_v55 = vsel %vm5084_vm1, %v2989_v6, %v2985_v17  ;;  %v3000_v35 = vsel %vm2999_vm10, %v3620_v61, %v2996_v24  ;;  %v3048_v43 = vand.u32 2147483648, %v5110_v40  ;;  %v5151_v18 = vadd.f32 1.0, %v3628_v38  ;;  %vm5168_vm12 = vmor %vm3027_vm4, %vm3028_vm11 }
 0x25f   : > { %v5153_v58 = vpop.eup %3629  ;;  %v5157_v2 = vsel %vm5091_vm2, %v3004_v39, %v3000_v35  ;;  %v3015_v15 = vsel %vm5138_vm9, %v3622_v5, %v3011_v16  ;;  %v3025_v51 = vmul.f32 %v3626_v52, %v3024_v62  ;;  %v3046_v21 = vand.u32 2147483647, %v5110_v40 }
 0x260   : > { %v5164_v6 = vsel %vm5098_vm3, %v3019_v11, %v3015_v15  ;;  %3635 = vrcp.f32 %v5151_v18  ;;  %vm2592_vm14 = vweird.f32 %v5053_v9  ;;  %v2598_v39 = vand.u32 2147483648, %v5053_v9 }
 0x261   : > { %v3632_v1 = vpop.eup %3631  ;;  %v3026_v37 = vadd.f32 %v3626_v52, %v3025_v51  ;;  %vm3042_vm15 = vweird.f32 %v5110_v40  ;;  %vm5177_vm0 = vcmp.eq.f32.partialorder %v2596_v29, 8.507059e+37  ;;  %v3049_v38 = vor.u32 1.1754944e-38, %v3048_v43 }
 0x262   : > { %v3634_v11 = vpop.eup %3633  ;;  %v3063_v17 = vand.u32 2147483648, %v5151_v18  ;;  %v2588_v56 = vmul.f32 %v5153_v58, %v5053_v9  ;;  %vm5189_vm1 = vcmp.eq.f32.partialorder %v3046_v21, 8.507059e+37  ;;  %v3061_v29 = vand.u32 2147483647, %v5151_v18 }
 0x263   : > { %v3030_v36 = vsel %vm5168_vm12, %v3626_v52, %v3026_v37  ;;  %v3038_v16 = vmul.f32 %v3634_v11, %v5110_v40  ;;  %v5198_v43 = vadd.f32 1.0, %v3632_v1  ;;  %vm2593_vm2 = vweird.f32 %v5153_v58 }
 0x264   : > { %v5196_v35 = vsel %vm5121_vm8, %v3034_v42, %v3030_v36  ;;  %v2589_v15 = vsub.f32 1.0, %v2588_v56  ;;  %vm3043_vm3 = vweird.f32 %v3634_v11  ;;  %vm3057_vm4 = vweird.f32 %v5151_v18  ;;  %vm5216_vm5 = vmor %vm2592_vm14, %vm2593_vm2 }
 0x265   : > { %v3039_v51 = vsub.f32 1.0, %v3038_v16  ;;  %v3064_v52 = vor.u32 1.1754944e-38, %v3063_v17  ;;  %3637 = vrcp.f32 %v5088_v32  ;;  %v2599_v37 = vor.u32 1.1754944e-38, %v2598_v39  ;;  %vm3044_vm9 = vmor %vm3042_vm15, %vm3043_vm3 }
 0x266   : > { %v3636_v21 = vpop.eup %3635  ;;  %v2590_v61 = vmul.f32 %v5153_v58, %v2589_v15  ;;  %v2611_v26 = vand.u32 2147483647, %v5088_v32  ;;  %3639 = vrcp.f32 %v5125_v25  ;;  %vm5208_vm6 = vcmp.eq.f32.partialorder %v3061_v29, 8.507059e+37 }
 0x267   : > { %v3040_v1 = vmul.f32 %v3634_v11, %v3039_v51  ;;  %v3053_v56 = vmul.f32 %v3636_v21, %v5151_v18  ;;  %v2613_v39 = vand.u32 2147483648, %v5088_v32  ;;  %vm3058_vm7 = vweird.f32 %v3636_v21 }
 0x268   : > { %v2591_v16 = vadd.f32 %v5153_v58, %v2590_v61  ;;  %vm2607_vm8 = vweird.f32 %v5088_v32  ;;  %v2626_v29 = vand.u32 2147483647, %v5125_v25  ;;  %v2628_v24 = vand.u32 2147483648, %v5125_v25  ;;  %vm3059_vm2 = vmor %vm3057_vm4, %vm3058_vm7 }
 0x269   : > { %v3041_v15 = vadd.f32 %v3634_v11, %v3040_v1  ;;  %v3054_v51 = vsub.f32 1.0, %v3053_v56  ;;  %3641 = vrcp.f32 %v5198_v43  ;;  %vm5232_vm10 = vcmp.eq.f32.partialorder %v2611_v26, 8.507059e+37 }
 0x26a   : > { %v2595_v9 = vsel %vm5216_vm5, %v5153_v58, %v2591_v16  ;;  %vm2622_vm11 = vweird.f32 %v5125_v25  ;;  %v2641_v1 = vand.u32 2147483647, %v5198_v43  ;;  %v2614_v47 = vor.u32 1.1754944e-38, %v2613_v39 }
 0x26b   : > { %v3638_v56 = vpop.eup %3637  ;;  %v3045_v42 = vsel %vm3044_vm9, %v3634_v11, %v3041_v15  ;;  %v3055_v5 = vmul.f32 %v3636_v21, %v3054_v51  ;;  %vm5238_vm12 = vcmp.eq.f32.partialorder %v2626_v29, 8.507059e+37  ;;  %v2600_v26 = vsel %vm5177_vm0, %v2599_v37, %v2595_v9 }
 0x26c   : > { %v3640_v40 = vpop.eup %3639  ;;  %v5244_v58 = vsel %vm5189_vm1, %v3049_v38, %v3045_v42  ;;  %v2603_v17 = vmul.f32 %v3638_v56, %v5088_v32  ;;  %vm2637_vm14 = vweird.f32 %v5198_v43  ;;  %vm2608_vm15 = vweird.f32 %v3638_v56 }
 0x26d   : > { %v3056_v16 = vadd.f32 %v3636_v21, %v3055_v5  ;;  %v2618_v11 = vmul.f32 %v3640_v40, %v5125_v25  ;;  %v2629_v39 = vor.u32 1.1754944e-38, %v2628_v24  ;;  %v3125_v29 = vrot.slane %v5244_v58, 2  ;;  %vm5266_vm7 = vmor %vm2607_vm8, %vm2608_vm15 }
 0x26e   : > { %v2604_v38 = vsub.f32 1.0, %v2603_v17  ;;  %vm2623_vm1 = vweird.f32 %v3640_v40  ;;  %vm5255_vm3 = vcmp.eq.f32.partialorder %v2641_v1, 8.507059e+37  ;;  %v2643_v62 = vand.u32 2147483648, %v5198_v43 }
 0x26f   : > { %v3642_v37 = vpop.eup %3641  ;;  %v3060_v5 = vsel %vm3059_vm2, %v3636_v21, %v3056_v16  ;;  %v2619_v42 = vsub.f32 1.0, %v2618_v11  ;;  %vm3129_vm0 = vcmask 1042434   ;;  %vm3133_vm5 = vcmask 1044484  }
 0x270   : > { %v3065_v24 = vsel %vm5208_vm6, %v3064_v52, %v3060_v5  ;;  %v2605_v15 = vmul.f32 %v3638_v56, %v2604_v38  ;;  %v2633_v18 = vmul.f32 %v3642_v37, %v5198_v43  ;;  %vm3131_vm4 = vcmask 1041408   ;;  %vm5273_vm6 = vmor %vm2622_vm11, %vm2623_vm1 }
 0x271   : > { %v3126_v51 = vrot.slane %v3065_v24, 1  ;;  %v2620_v21 = vmul.f32 %v3640_v40, %v2619_v42  ;;  %vm2638_vm9 = vweird.f32 %v3642_v37  ;;  %vm3135_vm2 = vcmask 1046534  }
 0x272   : > { %v2606_v1 = vadd.f32 %v3638_v56, %v2605_v15  ;;  %v2634_v36 = vsub.f32 1.0, %v2633_v18  ;;  %v2644_v17 = vor.u32 1.1754944e-38, %v2643_v62  ;;  %v3134_v32 = vsel %vm3133_vm5, %v3102_v46, %v3103_v45  ;;  %vm5307_vm11 = vmor %vm2637_vm14, %vm2638_vm9 }
 0x273   : > { %v2621_v16 = vadd.f32 %v3640_v40, %v2620_v21  ;;  %vm3137_vm8 = vcmask 1045508   ;;  %vm3139_vm15 = vcmask 1043456   ;;  %v3141_v25 = vsel %vm3127_vm13, %v4535_v8, %v3106_v12 }
 0x274   : > { %v2610_v11 = vsel %vm5266_vm7, %v3638_v56, %v2606_v1  ;;  %v2635_v38 = vmul.f32 %v3642_v37, %v2634_v36  ;;  %v3142_v63 = vsel %vm3129_vm0, %v3107_v53, %v3108_v23  ;;  %v3144_v7 = vsel %vm3133_vm5, %v3109_v22, %v3110_v33 }
 0x275   : > { %v2615_v46 = vsel %vm5232_vm10, %v2614_v47, %v2610_v11  ;;  %v2625_v45 = vsel %vm5273_vm6, %v3640_v40, %v2621_v16  ;;  %v3143_v8 = vsel %vm3131_vm4, %v3141_v25, %v3142_v63  ;;  %v3145_v12 = vsel %vm3135_vm2, %v3111_v27, %v3112_v4 }
 0x276   : > { %v2630_v20 = vsel %vm5238_vm12, %v2629_v39, %v2625_v45  ;;  %v2636_v28 = vadd.f32 %v3642_v37, %v2635_v38  ;;  %v3099_v53 = vrot.slane %v2615_v46, 7  ;;  %v3146_v23 = vsel %vm3137_vm8, %v3144_v7, %v3145_v12 }
 0x277   : > { %v5529_v13 = vrot.slane %v4507_v50, 1  ;;  %v5530_v48 = vrot.slane %v4502_v49, 2  ;;  %v3147_v33 = vsel %vm3139_vm15, %v3143_v8, %v3146_v23  ;;  %v5531_v34 = vrot.slane %v4815_v30, 7 }
 0x278   : > { %v5532_v27 = vrot.slane %v4946_v54, 5  ;;  %v5533_v4 = vrot.slane %v4902_v59, 6  ;;  %v2640_v49 = vsel %vm5307_vm11, %v3642_v37, %v2636_v28  ;;  %v3100_v50 = vrot.slane %v2630_v20, 6  ;;  %3167 = vst [vmem:[%s161_s16 + $0x8] sm:$0xff] %v3147_v33 }
 0x279   : > { %v3136_v22 = vsel %vm3135_vm2, %v5530_v48, %v5529_v13  ;;  %v3148_v31 = vsel %vm3127_vm13, %v4794_v19, %v5531_v34  ;;  %v3128_v47 = vsel %vm3127_vm13, %v2600_v26, %v3099_v53  ;;  %v5534_v30 = vrot.slane %v5005_v3, 3 }
 0x27a   : > { %v3149_v44 = vsel %vm3129_vm0, %v5533_v4, %v5532_v27  ;;  %v5535_v19 = vrot.slane %v4987_v10, 4  ;;  %v2645_v59 = vsel %vm5255_vm3, %v2644_v17, %v2640_v49  ;;  %v5536_v61 = vrot.slane %v5021_v57, 1 }
 0x27b   : > { %v3150_v43 = vsel %vm3131_vm4, %v3148_v31, %v3149_v44  ;;  %v5537_v56 = vrot.slane %v5009_v14, 2  ;;  %v5538_v26 = vrot.slane %v5157_v2, 5  ;;  %v5539_v3 = vrot.slane %v5148_v55, 6 }
 0x27c   : > { %v3151_v54 = vsel %vm3133_vm5, %v5535_v19, %v5534_v30  ;;  %v3101_v39 = vrot.slane %v2645_v59, 5  ;;  %v5540_v41 = vrot.slane %v5196_v35, 3  ;;  %v5541_v37 = vrot.slane %v5164_v6, 4 }
 0x27d   : > { %v3152_v40 = vsel %vm3135_vm2, %v5537_v56, %v5536_v61  ;;  %v3156_v10 = vsel %vm3129_vm0, %v5539_v3, %v5538_v26  ;;  %v3159_v14 = vsel %vm3135_vm2, %v3125_v29, %v3126_v51  ;;  %v3138_v57 = vsel %vm3137_vm8, %v3134_v32, %v3136_v22 }
 0x27e   : > { %v3153_v62 = vsel %vm3137_vm8, %v3151_v54, %v3152_v40  ;;  %v3158_v5 = vsel %vm3133_vm5, %v5541_v37, %v5540_v41  ;;  %v3157_v2 = vsel %vm3131_vm4, %v5133_v0, %v3156_v10  ;;  %v3130_v6 = vsel %vm3129_vm0, %v3100_v50, %v3101_v39 }
 0x27f   : > { %v3154_v55 = vsel %vm3139_vm15, %v3150_v43, %v3153_v62  ;;  %v3160_v35 = vsel %vm3137_vm8, %v3158_v5, %v3159_v14  ;;  %v3132_v58 = vsel %vm3131_vm4, %v3128_v47, %v3130_v6 }
 0x280   : > { %v3161_v42 = vsel %vm3139_vm15, %v3157_v2, %v3160_v35  ;;  %3168 = vst [vmem:[%s161_s16 + $0x10] sm:$0xff] %v3154_v55  ;;  %v3140_v29 = vsel %vm3139_vm15, %v3132_v58, %v3138_v57 }
 0x281   : > { %3169 = vst [vmem:[%s161_s16 + $0x18] sm:$0xff] %v3161_v42 }
 0x282   : > { %3166 = vst [vmem:[%s161_s16] sm:$0xff] %v3140_v29 }
 0x283   : > { %3700 = shalt.err (!%p3697_p4)
}
 0x284   : > { %3464 = dma.vmem_to_hbm [thread:$0]  (%p3808_p10), %s3184_s17, 512, %s3186_s19, %s3171_s24  }
 0x285 PF: > { %p3475_p5 = scmp.ge.s32.totalorder %s3739_s12, 2  ;;  %s3197_s23 = sand.u32 1, %s3727_s9  }
 0x286   : > { %s3198_s3 = scalar_lea.sflag [#allocation4], %s3197_s23 }
 0x287   : > { %p3471_p7 = pnand %p3475_p5, %p3812_p11 }
 0x289   : > { %p3472_p8 = pneg %p3471_p7 }
 0x28b   : > { %3722 = dma.done.wait (%p3472_p8), %s3198_s3, 512  }
 0x28c   : > { %3724 = vsyncadd (%p3472_p8), %s3198_s3, 4294966784  ;;  %p15_p9 = scmp.ge.s32.totalorder %s3784_s15, 5   ;;  %s5542_s9 = smov %s3731_s10 }
 0x28d   : > { %s5543_s10 = smov %s3735_s11  ;;  %s5544_s11 = smov %s3796_s18 }
 0x28e   : > { %s5545_s12 = smov %s3784_s15  ;;  %17 = sbr.rel (!%p15_p9) target bundleno = 5 (0x5), region = 76 }
 0x293   :  { %3204 = vsyncpa [#allocation3], 1 }
 0x294   :  { %3206 = vsyncpa [#allocation3 + $0x1], 1 }
 0x295   :  { %3207 = vsyncpa [#allocation4], 1 }
 0x296   :  { %3209 = vsyncpa [#allocation4 + $0x1], 1 }

</bundles_post_ra>
